<compile_context>
chip_gen: v7x
topology: tpu7x:2x2x1
jax: 0.10.0
libtpu: 0.0.40
codegen_flags: <defaults>
</compile_context>

<pallas_src>
import functools

import jax
import jax.numpy as jnp
from jax.experimental import pallas as pl
from jax.experimental.pallas import tpu as pltpu


def _default_vmem_limit():
    """Scoped-VMEM budget: ~3/4 of physical per-core VMEM, capped, >= 32MB."""
    try:
        cap = int(pltpu.get_tpu_info().vmem_capacity_bytes)
        return max(32 << 20, min(3 * cap // 4, 100 << 20))
    except Exception:
        return 32 << 20


VMEM_LIMIT = _default_vmem_limit()


def _pick_sublane_tile(dim, target):
    """Largest multiple-of-8 tile <= target dividing dim (else full dim)."""
    if dim <= target:
        return dim
    t = (target // 8) * 8
    while t >= 8:
        if dim % t == 0:
            return t
        t -= 8
    return dim


def _pick_lane_tile(dim, target):
    """Largest lane tile <= target dividing dim, preferring 256- then
    128-multiples (v6e/v7x MXU is 256 wide; v5e is 128)."""
    if dim <= target:
        return dim
    for align in (256, 128):
        if dim % align == 0:
            t = (target // align) * align
            while t >= align:
                if dim % t == 0:
                    return t
                t -= align
    return dim  # no aligned divisor: fall back to the full dimension


# --------------------------- fused linear kernel ----------------------------

def _linear_kernel(*refs, activation, has_ln, has_res, eps, single_k):
    p = 0
    x_ref = refs[p]; p += 1
    g_ref = bln_ref = res_ref = acc_ref = None
    if has_ln:
        g_ref, bln_ref = refs[p], refs[p + 1]; p += 2
    w_ref, b_ref = refs[p], refs[p + 1]; p += 2
    if has_res:
        res_ref = refs[p]; p += 1
    o_ref = refs[p]; p += 1
    if not single_k:
        acc_ref = refs[p]

    xv = x_ref[...]
    if has_ln:                          # LayerNorm prologue (full-K block)
        xf = xv.astype(jnp.float32)
        mu = jnp.mean(xf, axis=-1, keepdims=True)
        var = jnp.mean(jnp.square(xf - mu), axis=-1, keepdims=True)
        xv = (xf - mu) * jax.lax.rsqrt(var + eps) * g_ref[...] + bln_ref[...]
    x_mat = xv.astype(jnp.bfloat16)

    def epilogue(y):
        y = y + b_ref[...].astype(jnp.float32)
        if activation == "gelu":
            # TODO(synk): PyTorch nn.GELU default is the exact erf GELU; the
            # tanh approximation is used here for guaranteed Mosaic lowering.
            y = jax.nn.gelu(y, approximate=True)
        if has_res:
            y = y + res_ref[...].astype(jnp.float32)
        return y.astype(o_ref.dtype)

    if single_k:
        # Single K step: no accumulator scratch, no pl.when, one direct store.
        o_ref[...] = epilogue(jnp.dot(x_mat, w_ref[...],
                                      preferred_element_type=jnp.float32))
    else:
        k = pl.program_id(2)

        @pl.when(k == 0)
        def _():
            acc_ref[...] = jnp.zeros_like(acc_ref)

        acc_ref[...] += jnp.dot(x_mat, w_ref[...],
                                preferred_element_type=jnp.float32)

        @pl.when(k == pl.num_programs(2) - 1)
        def _():
            o_ref[...] = epilogue(acc_ref[...])


def pallas_linear(x, w, b, *, ln=None, residual=None, activation=None,
                  out_dtype=jnp.bfloat16, tm_target=256, tn_target=512,
                  tk_target=512):
    """y = act(LN?(x) @ w + b) + residual?   (bf16 MXU, f32 accumulate)."""
    M, K = x.shape
    N = w.shape[1]
    has_ln = ln is not None
    has_res = residual is not None

    tm = _pick_sublane_tile(M, tm_target)
    # LN-fused linears keep the weight fully N-resident (gn == 1): LayerNorm
    # prologue runs once per M tile; weight blocks never cycle over N.
    tn = N if has_ln else _pick_lane_tile(N, tn_target)
    tk = K if has_ln else _pick_lane_tile(K, tk_target)
    gm, gn, gk = M // tm, N // tn, K // tk
    # Megacore (v7x): guarantee >= 2 parallel grid steps when shapes allow.
    if gm * gn == 1 and M >= 16 and M % 16 == 0:
        tm = M // 2
        gm = 2
    single_k = gk == 1

    in_specs = [pl.BlockSpec((tm, tk), lambda i, j, k: (i, k))]
    args = [x]
    if has_ln:
        g, bln = ln
        in_specs += [pl.BlockSpec((1, K), lambda i, j, k: (0, 0)),
                     pl.BlockSpec((1, K), lambda i, j, k: (0, 0))]
        args += [g, bln]
    in_specs += [pl.BlockSpec((tk, tn), lambda i, j, k: (k, j)),
                 pl.BlockSpec((1, tn), lambda i, j, k: (0, j))]
    args += [w, b]
    if has_res:
        in_specs.append(pl.BlockSpec((tm, tn), lambda i, j, k: (i, j)))
        args.append(residual)

    kernel = functools.partial(_linear_kernel, activation=activation,
                               has_ln=has_ln, has_res=has_res, eps=1e-5,
                               single_k=single_k)
    scratch = [] if single_k else [pltpu.VMEM((tm, tn), jnp.float32)]

    return pl.pallas_call(
        kernel,
        grid=(gm, gn, gk),
        in_specs=in_specs,
        out_specs=pl.BlockSpec((tm, tn), lambda i, j, k: (i, j)),
        out_shape=jax.ShapeDtypeStruct((M, N), out_dtype),
        scratch_shapes=scratch,
        compiler_params=pltpu.CompilerParams(
            dimension_semantics=("parallel", "parallel", "arbitrary"),
            vmem_limit_bytes=VMEM_LIMIT),
    )(*args)


# ---------------- fused MLP kernel: ln2 + fc1 + GELU + fc2 + residual --------

def _mlp_kernel(x_ref, g_ref, b_ref, w1_ref, b1_ref, w2_ref, b2_ref, o_ref, *,
                eps, mlp_chunk):
    x = x_ref[...].astype(jnp.float32)
    mu = jnp.mean(x, axis=-1, keepdims=True)
    var = jnp.mean(jnp.square(x - mu), axis=-1, keepdims=True)
    xn = ((x - mu) * jax.lax.rsqrt(var + eps) * g_ref[...]
          + b_ref[...]).astype(jnp.bfloat16)

    mlp = w1_ref.shape[1]
    y = x + b2_ref[...].astype(jnp.float32)      # residual + fc2 bias, f32
    # Chunk over the hidden (mlp) dim so the hidden activation stays small
    # and never leaves VMEM/vregs; static Python loop = static Ref slices.
    for c0 in range(0, mlp, mlp_chunk):
        c1 = min(c0 + mlp_chunk, mlp)
        h = jnp.dot(xn, w1_ref[:, c0:c1], preferred_element_type=jnp.float32)
        h = h + b1_ref[:, c0:c1].astype(jnp.float32)
        # TODO(synk): exact-erf GELU in PyTorch; tanh approx used here.
        h = jax.nn.gelu(h, approximate=True)
        y = y + jnp.dot(h.astype(jnp.bfloat16), w2_ref[c0:c1, :],
                        preferred_element_type=jnp.float32)
    o_ref[...] = y.astype(o_ref.dtype)


def pallas_mlp(x, g, b, w1, b1, w2, b2, *, tm_target=256, mlp_chunk=512):
    """x + fc2(GELU(fc1(LN2(x)))) in one kernel (hidden never hits HBM)."""
    M, K = x.shape
    mlp = w1.shape[1]
    tm = _pick_sublane_tile(M, tm_target)
    gm = M // tm
    if gm == 1 and M >= 16 and M % 16 == 0:      # megacore: >= 2 steps
        tm = M // 2
        gm = 2
    kernel = functools.partial(_mlp_kernel, eps=1e-5,
                               mlp_chunk=min(mlp_chunk, mlp))
    return pl.pallas_call(
        kernel,
        grid=(gm,),
        in_specs=[pl.BlockSpec((tm, K), lambda i: (i, 0)),
                  pl.BlockSpec((1, K), lambda i: (0, 0)),
                  pl.BlockSpec((1, K), lambda i: (0, 0)),
                  pl.BlockSpec((K, mlp), lambda i: (0, 0)),
                  pl.BlockSpec((1, mlp), lambda i: (0, 0)),
                  pl.BlockSpec((mlp, K), lambda i: (0, 0)),
                  pl.BlockSpec((1, K), lambda i: (0, 0))],
        out_specs=pl.BlockSpec((tm, K), lambda i: (i, 0)),
        out_shape=jax.ShapeDtypeStruct((M, K), jnp.float32),
        compiler_params=pltpu.CompilerParams(
            dimension_semantics=("parallel",),
            vmem_limit_bytes=VMEM_LIMIT),
    )(x, g, b, w1, b1, w2, b2)


# ----------------------------- attention kernel -----------------------------

def _attn_kernel(qkv_ref, o_ref, *, heads, s_real, scale):
    S, three_w = qkv_ref.shape                 # batch dim squeezed via None
    W = three_w // 3
    hd = W // heads

    key_ids = jax.lax.broadcasted_iota(jnp.int32, (1, S), 1)
    key_valid = key_ids < s_real               # mask padded key positions

    for h in range(heads):                     # static unroll over heads
        # Ref-level slices: load only the lanes needed for this head.
        q = qkv_ref[:, h * hd:(h + 1) * hd]
        k = qkv_ref[:, W + h * hd:W + (h + 1) * hd]
        v = qkv_ref[:, 2 * W + h * hd:2 * W + (h + 1) * hd]
        s = jax.lax.dot_general(q, k, (((1,), (1,)), ((), ())),
                                preferred_element_type=jnp.float32) * scale
        s = jnp.where(key_valid, s, -1e30)
        s = s - jnp.max(s, axis=-1, keepdims=True)
        p = jnp.exp(s)
        p = p * pl.reciprocal(jnp.sum(p, axis=-1, keepdims=True), approx=True)
        # Per-head store into the lane-dense [S, W] output: no concatenation,
        # each head's vregs are freed immediately after its store.
        o_ref[:, h * hd:(h + 1) * hd] = jnp.dot(
            p.astype(jnp.bfloat16), v,
            preferred_element_type=jnp.float32).astype(o_ref.dtype)


def pallas_attention(qkv, heads, s_real):
    # qkv: [B, S_pad, 3*width] -> [B, S_pad, width]
    B, S, three_w = qkv.shape
    W = three_w // 3
    hd = W // heads
    kernel = functools.partial(_attn_kernel, heads=heads, s_real=s_real,
                               scale=1.0 / float(hd) ** 0.5)
    return pl.pallas_call(
        kernel,
        grid=(B,),
        in_specs=[pl.BlockSpec((None, S, three_w), lambda b: (b, 0, 0))],
        out_specs=pl.BlockSpec((None, S, W), lambda b: (b, 0, 0)),
        out_shape=jax.ShapeDtypeStruct((B, S, W), jnp.bfloat16),
        compiler_params=pltpu.CompilerParams(
            dimension_semantics=("parallel",),
            vmem_limit_bytes=VMEM_LIMIT),
    )(qkv)


# ------------------ fused pooled tail: LN + proj + L2-norm -------------------

def _head_kernel(x_ref, g_ref, b_ref, w_ref, pb_ref, o_ref, *,
                 normalize, eps_ln):
    x = x_ref[...].astype(jnp.float32)
    mu = jnp.mean(x, axis=-1, keepdims=True)
    var = jnp.mean(jnp.square(x - mu), axis=-1, keepdims=True)
    xn = (x - mu) * jax.lax.rsqrt(var + eps_ln) * g_ref[...] + b_ref[...]
    y = jnp.dot(xn.astype(jnp.bfloat16), w_ref[...],
                preferred_element_type=jnp.float32) + pb_ref[...]
    if normalize:   # torch.nn.functional.normalize(y, dim=-1)
        ssq = jnp.sum(y * y, axis=-1, keepdims=True)
        y = y * jax.lax.rsqrt(jnp.maximum(ssq, 1e-24))
    o_ref[...] = y


def pallas_head(x, g, b, w, pb, *, normalize=True):
    B, _ = x.shape
    N = w.shape[1]
    return pl.pallas_call(
        functools.partial(_head_kernel, normalize=normalize, eps_ln=1e-5),
        out_shape=jax.ShapeDtypeStruct((B, N), jnp.float32),
        compiler_params=pltpu.CompilerParams(vmem_limit_bytes=VMEM_LIMIT),
    )(x, g, b, w, pb)


# --------------------------- parameter creation ------------------------------

def init_params(key, *, in_chans, patch, width, heads, mlp_dim, depth,
                embed_dim, seq_len):
    del heads  # implied by width
    ks = jax.random.split(key, 16 + depth * 16)
    it = iter(ks)
    std = 0.02

    def rnd(shape, dtype=jnp.bfloat16):
        return (jax.random.normal(next(it), shape, jnp.float32) * std).astype(dtype)

    params = {
        "patch_w": rnd((in_chans * patch * patch, width)),   # conv as im2col
        "patch_b": jnp.zeros((1, width), jnp.float32),
        "cls": rnd((1, 1, width), jnp.float32),
        "pos": rnd((1, seq_len, width), jnp.float32),
        "blocks": [],
        "ln_post_g": jnp.ones((1, width), jnp.float32),
        "ln_post_b": jnp.zeros((1, width), jnp.float32),
        "proj_w": rnd((width, embed_dim)),
        "proj_b": jnp.zeros((1, embed_dim), jnp.float32),
    }
    for _ in range(depth):
        params["blocks"].append({
            "ln1_g": jnp.ones((1, width), jnp.float32),
            "ln1_b": jnp.zeros((1, width), jnp.float32),
            "qkv_w": rnd((width, 3 * width)),
            "qkv_b": jnp.zeros((1, 3 * width), jnp.float32),
            "out_w": rnd((width, width)),
            "out_b": jnp.zeros((1, width), jnp.float32),
            "ln2_g": jnp.ones((1, width), jnp.float32),
            "ln2_b": jnp.zeros((1, width), jnp.float32),
            "fc1_w": rnd((width, mlp_dim)),
            "fc1_b": jnp.zeros((1, mlp_dim), jnp.float32),
            "fc2_w": rnd((mlp_dim, width)),
            "fc2_b": jnp.zeros((1, width), jnp.float32),
        })
    return params


# ------------------------------ forward pass ---------------------------------

def conch_vision_embedding_forward(params, images, *, patch, width, heads,
                                   normalize=True):
    """image_latent = F.normalize(visual(images)[0], dim=-1)."""
    B, C, H, W_img = images.shape
    hp, wp = H // patch, W_img // patch
    n_patches = hp * wp
    s_real = n_patches + 1
    s_pad = ((s_real + 15) // 16) * 16       # bf16 sublane (16-row) alignment
    # TODO(synk): for production S (~197) also pad the key axis to a
    # 128/256-multiple so attention scores are lane-dense; the in-kernel key
    # mask already keeps padded positions from affecting real tokens.

    # --- patch embedding: Conv2d(C, width, k=patch, s=patch) as im2col+matmul
    x = images.reshape(B, C, hp, patch, wp, patch)
    x = x.transpose(0, 2, 4, 1, 3, 5).reshape(B * n_patches, C * patch * patch)
    x = pallas_linear(x, params["patch_w"], params["patch_b"],
                      out_dtype=jnp.float32)
    x = x.reshape(B, n_patches, width)

    # --- prepend CLS, add positional embedding, pad; residual stream in f32
    cls = jnp.broadcast_to(params["cls"], (B, 1, width))
    x = jnp.concatenate([cls, x], axis=1) + params["pos"][:, :s_real, :]
    if s_pad > s_real:
        x = jnp.pad(x, ((0, 0), (0, s_pad - s_real), (0, 0)))
    M = B * s_pad
    x = x.reshape(M, width)

    # --- pre-norm transformer blocks (LN / residual fused into the matmuls)
    for blk in params["blocks"]:
        # attention branch: (ln1 + qkv) -> attention -> (out-proj + residual)
        qkv = pallas_linear(x, blk["qkv_w"], blk["qkv_b"],
                            ln=(blk["ln1_g"], blk["ln1_b"]))        # [M, 3W]
        attn = pallas_attention(qkv.reshape(B, s_pad, 3 * width),
                                heads, s_real)                      # [B,S,W]
        x = pallas_linear(attn.reshape(M, width), blk["out_w"], blk["out_b"],
                          residual=x, out_dtype=jnp.float32)
        # MLP branch: single fused kernel; [M, mlp] hidden never hits HBM.
        x = pallas_mlp(x, blk["ln2_g"], blk["ln2_b"],
                       blk["fc1_w"], blk["fc1_b"],
                       blk["fc2_w"], blk["fc2_b"])

    # --- pooled image latent: CLS token -> fused LN + projection + L2-norm
    # TODO(synk): CONCH's open_clip vision tower uses an AttentionalPooler;
    # CLS-token pooling + linear projection is used as the synthetic stand-in.
    cls_tok = x.reshape(B, s_pad, width)[:, 0, :]                   # [B, W]
    return pallas_head(cls_tok, params["ln_post_g"], params["ln_post_b"],
                       params["proj_w"], params["proj_b"],
                       normalize=normalize)


# ---------------------------------- main --------------------------------------

if __name__ == "__main__":
    B, C, H, W = 2, 3, 32, 32
    PATCH = 8
    WIDTH = 128
    HEADS = 4
    MLP = 256
    DEPTH = 2
    EMBED_DIM = 512     # matches self.embed_dim in the PyTorch module

    key = jax.random.PRNGKey(0)
    pkey, xkey = jax.random.split(key)

    n_patches = (H // PATCH) * (W // PATCH)
    params = init_params(pkey, in_chans=C, patch=PATCH, width=WIDTH,
                         heads=HEADS, mlp_dim=MLP, depth=DEPTH,
                         embed_dim=EMBED_DIM, seq_len=n_patches + 1)

    images = jax.random.normal(xkey, (B, C, H, W), jnp.float32)

    fwd = jax.jit(functools.partial(conch_vision_embedding_forward,
                                    patch=PATCH, width=WIDTH, heads=HEADS,
                                    normalize=True))
    latent = jax.block_until_ready(fwd(params, images))

    assert latent.shape == (B, EMBED_DIM)
    norms = jnp.linalg.norm(latent, axis=-1)
    assert bool(jnp.all(jnp.abs(norms - 1.0) < 1e-4))
    print("KERNEL_OK")
</pallas_src>

<mosaic_0001>
module attributes {stable_mosaic.version = 11 : i64} {
  func.func @_linear_kernel(%arg0: i32, %arg1: i32, %arg2: i32, %arg3: memref<16x192xf32, #tpu.memory_space<vmem>>, %arg4: memref<192x128xbf16, #tpu.memory_space<vmem>>, %arg5: memref<1x128xf32, #tpu.memory_space<vmem>>, %arg6: memref<16x128xf32, #tpu.memory_space<vmem>>) attributes {dimension_semantics = [#tpu.dimension_semantics<parallel>, #tpu.dimension_semantics<parallel>, #tpu.dimension_semantics<arbitrary>], iteration_bounds = array<i64: 2, 1, 1>, scalar_prefetch = 0 : i64, scratch_operands = 0 : i64, tpu.core_type = #tpu.core_type<tc>, window_params = [{transform_indices = @transform_0, window_bounds = array<i64: 16, 192>}, {transform_indices = @transform_1, window_bounds = array<i64: 192, 128>}, {transform_indices = @transform_2, window_bounds = array<i64: 1, 128>}, {transform_indices = @transform_3, window_bounds = array<i64: 16, 128>}]} {
    %c0 = arith.constant 0 : index
    %c0_0 = arith.constant 0 : index
    %0 = vector.load %arg3[%c0, %c0_0] : memref<16x192xf32, #tpu.memory_space<vmem>>, vector<16x192xf32>
    %1 = arith.truncf %0 : vector<16x192xf32> to vector<16x192xbf16>
    %c0_1 = arith.constant 0 : index
    %c0_2 = arith.constant 0 : index
    %2 = vector.load %arg4[%c0_1, %c0_2] : memref<192x128xbf16, #tpu.memory_space<vmem>>, vector<192x128xbf16>
    %cst = arith.constant dense<0.000000e+00> : vector<16x128xf32>
    %3 = tpu.matmul %1, %2, %cst {dimension_numbers = #tpu.dot_dimension_numbers<[1], [0], [0], [1], [0, 0, 1, 1], [], []>} : vector<16x192xbf16>, vector<192x128xbf16>, vector<16x128xf32> -> vector<16x128xf32>
    %c0_3 = arith.constant 0 : index
    %c0_4 = arith.constant 0 : index
    %4 = vector.load %arg5[%c0_3, %c0_4] : memref<1x128xf32, #tpu.memory_space<vmem>>, vector<1x128xf32>
    %5 = vector.broadcast %4 : vector<1x128xf32> to vector<16x128xf32>
    %6 = arith.addf %3, %5 : vector<16x128xf32>
    %c0_5 = arith.constant 0 : index
    %c0_6 = arith.constant 0 : index
    %7 = vector.load %arg6[%c0_5, %c0_6] : memref<16x128xf32, #tpu.memory_space<vmem>>, vector<16x128xf32>
    tpu.vector_store %arg6[%c0_5, %c0_6], %6 {strides = array<i32>} : memref<16x128xf32, #tpu.memory_space<vmem>>, vector<16x128xf32>,
    return
  }
  func.func @transform_0(%arg0: i32, %arg1: i32, %arg2: i32) -> (i32, i32) {
    %c0_i32 = arith.constant 0 : i32
    return %arg0, %arg2 : i32, i32
  }
  func.func @transform_1(%arg0: i32, %arg1: i32, %arg2: i32) -> (i32, i32) {
    %c0_i32 = arith.constant 0 : i32
    return %arg2, %arg1 : i32, i32
  }
  func.func @transform_2(%arg0: i32, %arg1: i32, %arg2: i32) -> (i32, i32) {
    %c0_i32 = arith.constant 0 : i32
    %c0_i32_0 = arith.constant 0 : i32
    return %c0_i32, %arg1 : i32, i32
  }
  func.func @transform_3(%arg0: i32, %arg1: i32, %arg2: i32) -> (i32, i32) {
    %c0_i32 = arith.constant 0 : i32
    return %arg0, %arg1 : i32, i32
  }
}

module attributes {stable_mosaic.version = 11 : i64} {
  func.func @_linear_kernel(%arg0: i32, %arg1: i32, %arg2: i32, %arg3: memref<32x128xf32, #tpu.memory_space<vmem>>, %arg4: memref<1x128xf32, #tpu.memory_space<vmem>>, %arg5: memref<1x128xf32, #tpu.memory_space<vmem>>, %arg6: memref<128x384xbf16, #tpu.memory_space<vmem>>, %arg7: memref<1x384xf32, #tpu.memory_space<vmem>>, %arg8: memref<32x384xbf16, #tpu.memory_space<vmem>>) attributes {dimension_semantics = [#tpu.dimension_semantics<parallel>, #tpu.dimension_semantics<parallel>, #tpu.dimension_semantics<arbitrary>], iteration_bounds = array<i64: 2, 1, 1>, scalar_prefetch = 0 : i64, scratch_operands = 0 : i64, tpu.core_type = #tpu.core_type<tc>, window_params = [{transform_indices = @transform_0, window_bounds = array<i64: 32, 128>}, {pipeline_mode = #tpu.pipeline_mode<synchronous>, transform_indices = @transform_1, window_bounds = array<i64: 1, 128>}, {pipeline_mode = #tpu.pipeline_mode<synchronous>, transform_indices = @transform_2, window_bounds = array<i64: 1, 128>}, {transform_indices = @transform_3, window_bounds = array<i64: 128, 384>}, {transform_indices = @transform_4, window_bounds = array<i64: 1, 384>}, {transform_indices = @transform_5, window_bounds = array<i64: 32, 384>}]} {
    %c0 = arith.constant 0 : index
    %c0_0 = arith.constant 0 : index
    %0 = vector.load %arg3[%c0, %c0_0] : memref<32x128xf32, #tpu.memory_space<vmem>>, vector<32x128xf32>
    %cst = arith.constant dense<0.000000e+00> : vector<32xf32>
    %1 = vector.multi_reduction <add>, %0, %cst [1] : vector<32x128xf32> to vector<32xf32>
    %2 = vector.shape_cast %1 : vector<32xf32> to vector<32x1xf32>
    %cst_1 = arith.constant 1.280000e+02 : f32
    %3 = vector.broadcast %cst_1 : f32 to vector<32x1xf32>
    %4 = arith.divf %2, %3 : vector<32x1xf32>
    %5 = vector.broadcast %4 : vector<32x1xf32> to vector<32x128xf32>
    %6 = arith.subf %0, %5 : vector<32x128xf32>
    %7 = arith.mulf %6, %6 : vector<32x128xf32>
    %cst_2 = arith.constant dense<0.000000e+00> : vector<32xf32>
    %8 = vector.multi_reduction <add>, %7, %cst_2 [1] : vector<32x128xf32> to vector<32xf32>
    %9 = vector.shape_cast %8 : vector<32xf32> to vector<32x1xf32>
    %cst_3 = arith.constant 1.280000e+02 : f32
    %10 = vector.broadcast %cst_3 : f32 to vector<32x1xf32>
    %11 = arith.divf %9, %10 : vector<32x1xf32>
    %12 = vector.broadcast %4 : vector<32x1xf32> to vector<32x128xf32>
    %13 = arith.subf %0, %12 : vector<32x128xf32>
    %cst_4 = arith.constant 9.99999974E-6 : f32
    %14 = vector.broadcast %cst_4 : f32 to vector<32x1xf32>
    %15 = arith.addf %11, %14 : vector<32x1xf32>
    %16 = math.rsqrt %15 : vector<32x1xf32>
    %17 = vector.broadcast %16 : vector<32x1xf32> to vector<32x128xf32>
    %18 = arith.mulf %13, %17 : vector<32x128xf32>
    %c0_5 = arith.constant 0 : index
    %c0_6 = arith.constant 0 : index
    %19 = vector.load %arg4[%c0_5, %c0_6] : memref<1x128xf32, #tpu.memory_space<vmem>>, vector<1x128xf32>
    %20 = vector.broadcast %19 : vector<1x128xf32> to vector<32x128xf32>
    %21 = arith.mulf %18, %20 : vector<32x128xf32>
    %c0_7 = arith.constant 0 : index
    %c0_8 = arith.constant 0 : index
    %22 = vector.load %arg5[%c0_7, %c0_8] : memref<1x128xf32, #tpu.memory_space<vmem>>, vector<1x128xf32>
    %23 = vector.broadcast %22 : vector<1x128xf32> to vector<32x128xf32>
    %24 = arith.addf %21, %23 : vector<32x128xf32>
    %25 = arith.truncf %24 : vector<32x128xf32> to vector<32x128xbf16>
    %c0_9 = arith.constant 0 : index
    %c0_10 = arith.constant 0 : index
    %26 = vector.load %arg6[%c0_9, %c0_10] : memref<128x384xbf16, #tpu.memory_space<vmem>>, vector<128x384xbf16>
    %cst_11 = arith.constant dense<0.000000e+00> : vector<32x384xf32>
    %27 = tpu.matmul %25, %26, %cst_11 {dimension_numbers = #tpu.dot_dimension_numbers<[1], [0], [0], [1], [0, 0, 1, 1], [], []>} : vector<32x128xbf16>, vector<128x384xbf16>, vector<32x384xf32> -> vector<32x384xf32>
    %c0_12 = arith.constant 0 : index
    %c0_13 = arith.constant 0 : index
    %28 = vector.load %arg7[%c0_12, %c0_13] : memref<1x384xf32, #tpu.memory_space<vmem>>, vector<1x384xf32>
    %29 = vector.broadcast %28 : vector<1x384xf32> to vector<32x384xf32>
    %30 = arith.addf %27, %29 : vector<32x384xf32>
    %31 = arith.truncf %30 : vector<32x384xf32> to vector<32x384xbf16>
    %c0_14 = arith.constant 0 : index
    %c0_15 = arith.constant 0 : index
    %32 = vector.load %arg8[%c0_14, %c0_15] : memref<32x384xbf16, #tpu.memory_space<vmem>>, vector<32x384xbf16>
    tpu.vector_store %arg8[%c0_14, %c0_15], %31 {strides = array<i32>} : memref<32x384xbf16, #tpu.memory_space<vmem>>, vector<32x384xbf16>,
    return
  }
  func.func @transform_0(%arg0: i32, %arg1: i32, %arg2: i32) -> (i32, i32) {
    %c0_i32 = arith.constant 0 : i32
    return %arg0, %arg2 : i32, i32
  }
  func.func @transform_1(%arg0: i32, %arg1: i32, %arg2: i32) -> (i32, i32) {
    %c0_i32 = arith.constant 0 : i32
    %c0_i32_0 = arith.constant 0 : i32
    %c0_i32_1 = arith.constant 0 : i32
    return %c0_i32, %c0_i32_0 : i32, i32
  }
  func.func @transform_2(%arg0: i32, %arg1: i32, %arg2: i32) -> (i32, i32) {
    %c0_i32 = arith.constant 0 : i32
    %c0_i32_0 = arith.constant 0 : i32
    %c0_i32_1 = arith.constant 0 : i32
    return %c0_i32, %c0_i32_0 : i32, i32
  }
  func.func @transform_3(%arg0: i32, %arg1: i32, %arg2: i32) -> (i32, i32) {
    %c0_i32 = arith.constant 0 : i32
    return %arg2, %arg1 : i32, i32
  }
  func.func @transform_4(%arg0: i32, %arg1: i32, %arg2: i32) -> (i32, i32) {
    %c0_i32 = arith.constant 0 : i32
    %c0_i32_0 = arith.constant 0 : i32
    return %c0_i32, %arg1 : i32, i32
  }
  func.func @transform_5(%arg0: i32, %arg1: i32, %arg2: i32) -> (i32, i32) {
    %c0_i32 = arith.constant 0 : i32
    return %arg0, %arg1 : i32, i32
  }
}

module attributes {stable_mosaic.version = 11 : i64} {
  func.func @_linear_kernel(%arg0: i32, %arg1: i32, %arg2: i32, %arg3: memref<32x128xbf16, #tpu.memory_space<vmem>>, %arg4: memref<128x128xbf16, #tpu.memory_space<vmem>>, %arg5: memref<1x128xf32, #tpu.memory_space<vmem>>, %arg6: memref<32x128xf32, #tpu.memory_space<vmem>>, %arg7: memref<32x128xf32, #tpu.memory_space<vmem>>) attributes {dimension_semantics = [#tpu.dimension_semantics<parallel>, #tpu.dimension_semantics<parallel>, #tpu.dimension_semantics<arbitrary>], iteration_bounds = array<i64: 2, 1, 1>, scalar_prefetch = 0 : i64, scratch_operands = 0 : i64, tpu.core_type = #tpu.core_type<tc>, window_params = [{transform_indices = @transform_0, window_bounds = array<i64: 32, 128>}, {transform_indices = @transform_1, window_bounds = array<i64: 128, 128>}, {transform_indices = @transform_2, window_bounds = array<i64: 1, 128>}, {transform_indices = @transform_3, window_bounds = array<i64: 32, 128>}, {transform_indices = @transform_4, window_bounds = array<i64: 32, 128>}]} {
    %c0 = arith.constant 0 : index
    %c0_0 = arith.constant 0 : index
    %0 = vector.load %arg3[%c0, %c0_0] : memref<32x128xbf16, #tpu.memory_space<vmem>>, vector<32x128xbf16>
    %c0_1 = arith.constant 0 : index
    %c0_2 = arith.constant 0 : index
    %1 = vector.load %arg4[%c0_1, %c0_2] : memref<128x128xbf16, #tpu.memory_space<vmem>>, vector<128x128xbf16>
    %cst = arith.constant dense<0.000000e+00> : vector<32x128xf32>
    %2 = tpu.matmul %0, %1, %cst {dimension_numbers = #tpu.dot_dimension_numbers<[1], [0], [0], [1], [0, 0, 1, 1], [], []>} : vector<32x128xbf16>, vector<128x128xbf16>, vector<32x128xf32> -> vector<32x128xf32>
    %c0_3 = arith.constant 0 : index
    %c0_4 = arith.constant 0 : index
    %3 = vector.load %arg5[%c0_3, %c0_4] : memref<1x128xf32, #tpu.memory_space<vmem>>, vector<1x128xf32>
    %4 = vector.broadcast %3 : vector<1x128xf32> to vector<32x128xf32>
    %5 = arith.addf %2, %4 : vector<32x128xf32>
    %c0_5 = arith.constant 0 : index
    %c0_6 = arith.constant 0 : index
    %6 = vector.load %arg6[%c0_5, %c0_6] : memref<32x128xf32, #tpu.memory_space<vmem>>, vector<32x128xf32>
    %7 = arith.addf %5, %6 : vector<32x128xf32>
    %c0_7 = arith.constant 0 : index
    %c0_8 = arith.constant 0 : index
    %8 = vector.load %arg7[%c0_7, %c0_8] : memref<32x128xf32, #tpu.memory_space<vmem>>, vector<32x128xf32>
    tpu.vector_store %arg7[%c0_7, %c0_8], %7 {strides = array<i32>} : memref<32x128xf32, #tpu.memory_space<vmem>>, vector<32x128xf32>,
    return
  }
  func.func @transform_0(%arg0: i32, %arg1: i32, %arg2: i32) -> (i32, i32) {
    %c0_i32 = arith.constant 0 : i32
    return %arg0, %arg2 : i32, i32
  }
  func.func @transform_1(%arg0: i32, %arg1: i32, %arg2: i32) -> (i32, i32) {
    %c0_i32 = arith.constant 0 : i32
    return %arg2, %arg1 : i32, i32
  }
  func.func @transform_2(%arg0: i32, %arg1: i32, %arg2: i32) -> (i32, i32) {
    %c0_i32 = arith.constant 0 : i32
    %c0_i32_0 = arith.constant 0 : i32
    return %c0_i32, %arg1 : i32, i32
  }
  func.func @transform_3(%arg0: i32, %arg1: i32, %arg2: i32) -> (i32, i32) {
    %c0_i32 = arith.constant 0 : i32
    return %arg0, %arg1 : i32, i32
  }
  func.func @transform_4(%arg0: i32, %arg1: i32, %arg2: i32) -> (i32, i32) {
    %c0_i32 = arith.constant 0 : i32
    return %arg0, %arg1 : i32, i32
  }
}

module attributes {stable_mosaic.version = 11 : i64} {
  func.func @_attn_kernel(%arg0: i32, %arg1: memref<1x32x384xbf16, #tpu.memory_space<vmem>>, %arg2: memref<1x32x128xbf16, #tpu.memory_space<vmem>>) attributes {dimension_semantics = [#tpu.dimension_semantics<parallel>], iteration_bounds = array<i64: 2>, scalar_prefetch = 0 : i64, scratch_operands = 0 : i64, tpu.core_type = #tpu.core_type<tc>, window_params = [{transform_indices = @transform_0, window_bounds = array<i64: 1, 32, 384>}, {transform_indices = @transform_1, window_bounds = array<i64: 1, 32, 128>}]} {
    %0 = tpu.iota {dimensions = array<i32: 1>} : vector<1x32xi32>
    %c17_i32 = arith.constant 17 : i32
    %1 = vector.broadcast %c17_i32 : i32 to vector<1x32xi32>
    %2 = arith.cmpi slt, %0, %1 : vector<1x32xi32>
    %c0 = arith.constant 0 : index
    %c0_0 = arith.constant 0 : index
    %c0_1 = arith.constant 0 : index
    %3 = vector.load %arg1[%c0, %c0_0, %c0_1] : memref<1x32x384xbf16, #tpu.memory_space<vmem>>, vector<1x32x32xbf16>
    %4 = vector.shape_cast %3 : vector<1x32x32xbf16> to vector<32x32xbf16>
    %c0_2 = arith.constant 0 : index
    %c0_3 = arith.constant 0 : index
    %c128 = arith.constant 128 : index
    %5 = vector.load %arg1[%c0_2, %c0_3, %c128] : memref<1x32x384xbf16, #tpu.memory_space<vmem>>, vector<1x32x32xbf16>
    %6 = vector.shape_cast %5 : vector<1x32x32xbf16> to vector<32x32xbf16>
    %c0_4 = arith.constant 0 : index
    %c0_5 = arith.constant 0 : index
    %c256 = arith.constant 256 : index
    %7 = vector.load %arg1[%c0_4, %c0_5, %c256] : memref<1x32x384xbf16, #tpu.memory_space<vmem>>, vector<1x32x32xbf16>
    %8 = vector.shape_cast %7 : vector<1x32x32xbf16> to vector<32x32xbf16>
    %cst = arith.constant dense<0.000000e+00> : vector<32x32xf32>
    %9 = tpu.matmul %4, %6, %cst {dimension_numbers = #tpu.dot_dimension_numbers<[1], [1], [0], [0], [0, 0, 1, 0], [], []>} : vector<32x32xbf16>, vector<32x32xbf16>, vector<32x32xf32> -> vector<32x32xf32>
    %cst_6 = arith.constant 0.176776692 : f32
    %10 = vector.broadcast %cst_6 : f32 to vector<32x32xf32>
    %11 = arith.mulf %9, %10 : vector<32x32xf32>
    %cst_7 = arith.constant -1.000000e+30 : f32
    %12 = vector.shape_cast %2 : vector<1x32xi1> to vector<1x32xi1>
    %13 = vector.broadcast %12 : vector<1x32xi1> to vector<32x32xi1>
    %14 = vector.broadcast %cst_7 : f32 to vector<32x32xf32>
    %15 = arith.select %13, %11, %14 : vector<32x32xi1>, vector<32x32xf32>
    %cst_8 = arith.constant dense<0xFF800000> : vector<32xf32>
    %16 = vector.multi_reduction <maximumf>, %15, %cst_8 [1] : vector<32x32xf32> to vector<32xf32>
    %17 = vector.shape_cast %16 : vector<32xf32> to vector<32x1xf32>
    %18 = vector.broadcast %17 : vector<32x1xf32> to vector<32x32xf32>
    %19 = arith.subf %15, %18 : vector<32x32xf32>
    %20 = math.exp %19 : vector<32x32xf32>
    %cst_9 = arith.constant dense<0.000000e+00> : vector<32xf32>
    %21 = vector.multi_reduction <add>, %20, %cst_9 [1] : vector<32x32xf32> to vector<32xf32>
    %22 = vector.shape_cast %21 : vector<32xf32> to vector<32x1xf32>
    %23 = tpu.reciprocal %22 {approx = true} : vector<32x1xf32> -> vector<32x1xf32>
    %24 = vector.broadcast %23 : vector<32x1xf32> to vector<32x32xf32>
    %25 = arith.mulf %20, %24 : vector<32x32xf32>
    %26 = arith.truncf %25 : vector<32x32xf32> to vector<32x32xbf16>
    %cst_10 = arith.constant dense<0.000000e+00> : vector<32x32xf32>
    %27 = tpu.matmul %26, %8, %cst_10 {dimension_numbers = #tpu.dot_dimension_numbers<[1], [0], [0], [1], [0, 0, 1, 1], [], []>} : vector<32x32xbf16>, vector<32x32xbf16>, vector<32x32xf32> -> vector<32x32xf32>
    %28 = arith.truncf %27 : vector<32x32xf32> to vector<32x32xbf16>
    %c0_11 = arith.constant 0 : index
    %c0_12 = arith.constant 0 : index
    %c0_13 = arith.constant 0 : index
    %29 = vector.load %arg2[%c0_11, %c0_12, %c0_13] : memref<1x32x128xbf16, #tpu.memory_space<vmem>>, vector<1x32x32xbf16>
    %30 = vector.shape_cast %29 : vector<1x32x32xbf16> to vector<32x32xbf16>
    %31 = vector.shape_cast %28 : vector<32x32xbf16> to vector<1x32x32xbf16>
    tpu.vector_store %arg2[%c0_11, %c0_12, %c0_13], %31 {strides = array<i32>} : memref<1x32x128xbf16, #tpu.memory_space<vmem>>, vector<1x32x32xbf16>,
    %c0_14 = arith.constant 0 : index
    %c0_15 = arith.constant 0 : index
    %c32 = arith.constant 32 : index
    %32 = vector.load %arg1[%c0_14, %c0_15, %c32] : memref<1x32x384xbf16, #tpu.memory_space<vmem>>, vector<1x32x32xbf16>
    %33 = vector.shape_cast %32 : vector<1x32x32xbf16> to vector<32x32xbf16>
    %c0_16 = arith.constant 0 : index
    %c0_17 = arith.constant 0 : index
    %c160 = arith.constant 160 : index
    %34 = vector.load %arg1[%c0_16, %c0_17, %c160] : memref<1x32x384xbf16, #tpu.memory_space<vmem>>, vector<1x32x32xbf16>
    %35 = vector.shape_cast %34 : vector<1x32x32xbf16> to vector<32x32xbf16>
    %c0_18 = arith.constant 0 : index
    %c0_19 = arith.constant 0 : index
    %c288 = arith.constant 288 : index
    %36 = vector.load %arg1[%c0_18, %c0_19, %c288] : memref<1x32x384xbf16, #tpu.memory_space<vmem>>, vector<1x32x32xbf16>
    %37 = vector.shape_cast %36 : vector<1x32x32xbf16> to vector<32x32xbf16>
    %cst_20 = arith.constant dense<0.000000e+00> : vector<32x32xf32>
    %38 = tpu.matmul %33, %35, %cst_20 {dimension_numbers = #tpu.dot_dimension_numbers<[1], [1], [0], [0], [0, 0, 1, 0], [], []>} : vector<32x32xbf16>, vector<32x32xbf16>, vector<32x32xf32> -> vector<32x32xf32>
    %cst_21 = arith.constant 0.176776692 : f32
    %39 = vector.broadcast %cst_21 : f32 to vector<32x32xf32>
    %40 = arith.mulf %38, %39 : vector<32x32xf32>
    %cst_22 = arith.constant -1.000000e+30 : f32
    %41 = vector.shape_cast %2 : vector<1x32xi1> to vector<1x32xi1>
    %42 = vector.broadcast %41 : vector<1x32xi1> to vector<32x32xi1>
    %43 = vector.broadcast %cst_22 : f32 to vector<32x32xf32>
    %44 = arith.select %42, %40, %43 : vector<32x32xi1>, vector<32x32xf32>
    %cst_23 = arith.constant dense<0xFF800000> : vector<32xf32>
    %45 = vector.multi_reduction <maximumf>, %44, %cst_23 [1] : vector<32x32xf32> to vector<32xf32>
    %46 = vector.shape_cast %45 : vector<32xf32> to vector<32x1xf32>
    %47 = vector.broadcast %46 : vector<32x1xf32> to vector<32x32xf32>
    %48 = arith.subf %44, %47 : vector<32x32xf32>
    %49 = math.exp %48 : vector<32x32xf32>
    %cst_24 = arith.constant dense<0.000000e+00> : vector<32xf32>
    %50 = vector.multi_reduction <add>, %49, %cst_24 [1] : vector<32x32xf32> to vector<32xf32>
    %51 = vector.shape_cast %50 : vector<32xf32> to vector<32x1xf32>
    %52 = tpu.reciprocal %51 {approx = true} : vector<32x1xf32> -> vector<32x1xf32>
    %53 = vector.broadcast %52 : vector<32x1xf32> to vector<32x32xf32>
    %54 = arith.mulf %49, %53 : vector<32x32xf32>
    %55 = arith.truncf %54 : vector<32x32xf32> to vector<32x32xbf16>
    %cst_25 = arith.constant dense<0.000000e+00> : vector<32x32xf32>
    %56 = tpu.matmul %55, %37, %cst_25 {dimension_numbers = #tpu.dot_dimension_numbers<[1], [0], [0], [1], [0, 0, 1, 1], [], []>} : vector<32x32xbf16>, vector<32x32xbf16>, vector<32x32xf32> -> vector<32x32xf32>
    %57 = arith.truncf %56 : vector<32x32xf32> to vector<32x32xbf16>
    %c0_26 = arith.constant 0 : index
    %c0_27 = arith.constant 0 : index
    %c32_28 = arith.constant 32 : index
    %58 = vector.load %arg2[%c0_26, %c0_27, %c32_28] : memref<1x32x128xbf16, #tpu.memory_space<vmem>>, vector<1x32x32xbf16>
    %59 = vector.shape_cast %58 : vector<1x32x32xbf16> to vector<32x32xbf16>
    %60 = vector.shape_cast %57 : vector<32x32xbf16> to vector<1x32x32xbf16>
    tpu.vector_store %arg2[%c0_26, %c0_27, %c32_28], %60 {strides = array<i32>} : memref<1x32x128xbf16, #tpu.memory_space<vmem>>, vector<1x32x32xbf16>,
    %c0_29 = arith.constant 0 : index
    %c0_30 = arith.constant 0 : index
    %c64 = arith.constant 64 : index
    %61 = vector.load %arg1[%c0_29, %c0_30, %c64] : memref<1x32x384xbf16, #tpu.memory_space<vmem>>, vector<1x32x32xbf16>
    %62 = vector.shape_cast %61 : vector<1x32x32xbf16> to vector<32x32xbf16>
    %c0_31 = arith.constant 0 : index
    %c0_32 = arith.constant 0 : index
    %c192 = arith.constant 192 : index
    %63 = vector.load %arg1[%c0_31, %c0_32, %c192] : memref<1x32x384xbf16, #tpu.memory_space<vmem>>, vector<1x32x32xbf16>
    %64 = vector.shape_cast %63 : vector<1x32x32xbf16> to vector<32x32xbf16>
    %c0_33 = arith.constant 0 : index
    %c0_34 = arith.constant 0 : index
    %c320 = arith.constant 320 : index
    %65 = vector.load %arg1[%c0_33, %c0_34, %c320] : memref<1x32x384xbf16, #tpu.memory_space<vmem>>, vector<1x32x32xbf16>
    %66 = vector.shape_cast %65 : vector<1x32x32xbf16> to vector<32x32xbf16>
    %cst_35 = arith.constant dense<0.000000e+00> : vector<32x32xf32>
    %67 = tpu.matmul %62, %64, %cst_35 {dimension_numbers = #tpu.dot_dimension_numbers<[1], [1], [0], [0], [0, 0, 1, 0], [], []>} : vector<32x32xbf16>, vector<32x32xbf16>, vector<32x32xf32> -> vector<32x32xf32>
    %cst_36 = arith.constant 0.176776692 : f32
    %68 = vector.broadcast %cst_36 : f32 to vector<32x32xf32>
    %69 = arith.mulf %67, %68 : vector<32x32xf32>
    %cst_37 = arith.constant -1.000000e+30 : f32
    %70 = vector.shape_cast %2 : vector<1x32xi1> to vector<1x32xi1>
    %71 = vector.broadcast %70 : vector<1x32xi1> to vector<32x32xi1>
    %72 = vector.broadcast %cst_37 : f32 to vector<32x32xf32>
    %73 = arith.select %71, %69, %72 : vector<32x32xi1>, vector<32x32xf32>
    %cst_38 = arith.constant dense<0xFF800000> : vector<32xf32>
    %74 = vector.multi_reduction <maximumf>, %73, %cst_38 [1] : vector<32x32xf32> to vector<32xf32>
    %75 = vector.shape_cast %74 : vector<32xf32> to vector<32x1xf32>
    %76 = vector.broadcast %75 : vector<32x1xf32> to vector<32x32xf32>
    %77 = arith.subf %73, %76 : vector<32x32xf32>
    %78 = math.exp %77 : vector<32x32xf32>
    %cst_39 = arith.constant dense<0.000000e+00> : vector<32xf32>
    %79 = vector.multi_reduction <add>, %78, %cst_39 [1] : vector<32x32xf32> to vector<32xf32>
    %80 = vector.shape_cast %79 : vector<32xf32> to vector<32x1xf32>
    %81 = tpu.reciprocal %80 {approx = true} : vector<32x1xf32> -> vector<32x1xf32>
    %82 = vector.broadcast %81 : vector<32x1xf32> to vector<32x32xf32>
    %83 = arith.mulf %78, %82 : vector<32x32xf32>
    %84 = arith.truncf %83 : vector<32x32xf32> to vector<32x32xbf16>
    %cst_40 = arith.constant dense<0.000000e+00> : vector<32x32xf32>
    %85 = tpu.matmul %84, %66, %cst_40 {dimension_numbers = #tpu.dot_dimension_numbers<[1], [0], [0], [1], [0, 0, 1, 1], [], []>} : vector<32x32xbf16>, vector<32x32xbf16>, vector<32x32xf32> -> vector<32x32xf32>
    %86 = arith.truncf %85 : vector<32x32xf32> to vector<32x32xbf16>
    %c0_41 = arith.constant 0 : index
    %c0_42 = arith.constant 0 : index
    %c64_43 = arith.constant 64 : index
    %87 = vector.load %arg2[%c0_41, %c0_42, %c64_43] : memref<1x32x128xbf16, #tpu.memory_space<vmem>>, vector<1x32x32xbf16>
    %88 = vector.shape_cast %87 : vector<1x32x32xbf16> to vector<32x32xbf16>
    %89 = vector.shape_cast %86 : vector<32x32xbf16> to vector<1x32x32xbf16>
    tpu.vector_store %arg2[%c0_41, %c0_42, %c64_43], %89 {strides = array<i32>} : memref<1x32x128xbf16, #tpu.memory_space<vmem>>, vector<1x32x32xbf16>,
    %c0_44 = arith.constant 0 : index
    %c0_45 = arith.constant 0 : index
    %c96 = arith.constant 96 : index
    %90 = vector.load %arg1[%c0_44, %c0_45, %c96] : memref<1x32x384xbf16, #tpu.memory_space<vmem>>, vector<1x32x32xbf16>
    %91 = vector.shape_cast %90 : vector<1x32x32xbf16> to vector<32x32xbf16>
    %c0_46 = arith.constant 0 : index
    %c0_47 = arith.constant 0 : index
    %c224 = arith.constant 224 : index
    %92 = vector.load %arg1[%c0_46, %c0_47, %c224] : memref<1x32x384xbf16, #tpu.memory_space<vmem>>, vector<1x32x32xbf16>
    %93 = vector.shape_cast %92 : vector<1x32x32xbf16> to vector<32x32xbf16>
    %c0_48 = arith.constant 0 : index
    %c0_49 = arith.constant 0 : index
    %c352 = arith.constant 352 : index
    %94 = vector.load %arg1[%c0_48, %c0_49, %c352] : memref<1x32x384xbf16, #tpu.memory_space<vmem>>, vector<1x32x32xbf16>
    %95 = vector.shape_cast %94 : vector<1x32x32xbf16> to vector<32x32xbf16>
    %cst_50 = arith.constant dense<0.000000e+00> : vector<32x32xf32>
    %96 = tpu.matmul %91, %93, %cst_50 {dimension_numbers = #tpu.dot_dimension_numbers<[1], [1], [0], [0], [0, 0, 1, 0], [], []>} : vector<32x32xbf16>, vector<32x32xbf16>, vector<32x32xf32> -> vector<32x32xf32>
    %cst_51 = arith.constant 0.176776692 : f32
    %97 = vector.broadcast %cst_51 : f32 to vector<32x32xf32>
    %98 = arith.mulf %96, %97 : vector<32x32xf32>
    %cst_52 = arith.constant -1.000000e+30 : f32
    %99 = vector.shape_cast %2 : vector<1x32xi1> to vector<1x32xi1>
    %100 = vector.broadcast %99 : vector<1x32xi1> to vector<32x32xi1>
    %101 = vector.broadcast %cst_52 : f32 to vector<32x32xf32>
    %102 = arith.select %100, %98, %101 : vector<32x32xi1>, vector<32x32xf32>
    %cst_53 = arith.constant dense<0xFF800000> : vector<32xf32>
    %103 = vector.multi_reduction <maximumf>, %102, %cst_53 [1] : vector<32x32xf32> to vector<32xf32>
    %104 = vector.shape_cast %103 : vector<32xf32> to vector<32x1xf32>
    %105 = vector.broadcast %104 : vector<32x1xf32> to vector<32x32xf32>
    %106 = arith.subf %102, %105 : vector<32x32xf32>
    %107 = math.exp %106 : vector<32x32xf32>
    %cst_54 = arith.constant dense<0.000000e+00> : vector<32xf32>
    %108 = vector.multi_reduction <add>, %107, %cst_54 [1] : vector<32x32xf32> to vector<32xf32>
    %109 = vector.shape_cast %108 : vector<32xf32> to vector<32x1xf32>
    %110 = tpu.reciprocal %109 {approx = true} : vector<32x1xf32> -> vector<32x1xf32>
    %111 = vector.broadcast %110 : vector<32x1xf32> to vector<32x32xf32>
    %112 = arith.mulf %107, %111 : vector<32x32xf32>
    %113 = arith.truncf %112 : vector<32x32xf32> to vector<32x32xbf16>
    %cst_55 = arith.constant dense<0.000000e+00> : vector<32x32xf32>
    %114 = tpu.matmul %113, %95, %cst_55 {dimension_numbers = #tpu.dot_dimension_numbers<[1], [0], [0], [1], [0, 0, 1, 1], [], []>} : vector<32x32xbf16>, vector<32x32xbf16>, vector<32x32xf32> -> vector<32x32xf32>
    %115 = arith.truncf %114 : vector<32x32xf32> to vector<32x32xbf16>
    %c0_56 = arith.constant 0 : index
    %c0_57 = arith.constant 0 : index
    %c96_58 = arith.constant 96 : index
    %116 = vector.load %arg2[%c0_56, %c0_57, %c96_58] : memref<1x32x128xbf16, #tpu.memory_space<vmem>>, vector<1x32x32xbf16>
    %117 = vector.shape_cast %116 : vector<1x32x32xbf16> to vector<32x32xbf16>
    %118 = vector.shape_cast %115 : vector<32x32xbf16> to vector<1x32x32xbf16>
    tpu.vector_store %arg2[%c0_56, %c0_57, %c96_58], %118 {strides = array<i32>} : memref<1x32x128xbf16, #tpu.memory_space<vmem>>, vector<1x32x32xbf16>,
    return
  }
  func.func @transform_0(%arg0: i32) -> (i32, i32, i32) {
    %c0_i32 = arith.constant 0 : i32
    %c0_i32_0 = arith.constant 0 : i32
    %c0_i32_1 = arith.constant 0 : i32
    return %arg0, %c0_i32, %c0_i32_0 : i32, i32, i32
  }
  func.func @transform_1(%arg0: i32) -> (i32, i32, i32) {
    %c0_i32 = arith.constant 0 : i32
    %c0_i32_0 = arith.constant 0 : i32
    %c0_i32_1 = arith.constant 0 : i32
    return %arg0, %c0_i32, %c0_i32_0 : i32, i32, i32
  }
}

module attributes {stable_mosaic.version = 11 : i64} {
  func.func @_mlp_kernel(%arg0: i32, %arg1: memref<32x128xf32, #tpu.memory_space<vmem>>, %arg2: memref<1x128xf32, #tpu.memory_space<vmem>>, %arg3: memref<1x128xf32, #tpu.memory_space<vmem>>, %arg4: memref<128x256xbf16, #tpu.memory_space<vmem>>, %arg5: memref<1x256xf32, #tpu.memory_space<vmem>>, %arg6: memref<256x128xbf16, #tpu.memory_space<vmem>>, %arg7: memref<1x128xf32, #tpu.memory_space<vmem>>, %arg8: memref<32x128xf32, #tpu.memory_space<vmem>>) attributes {dimension_semantics = [#tpu.dimension_semantics<parallel>], iteration_bounds = array<i64: 2>, scalar_prefetch = 0 : i64, scratch_operands = 0 : i64, tpu.core_type = #tpu.core_type<tc>, window_params = [{transform_indices = @transform_0, window_bounds = array<i64: 32, 128>}, {pipeline_mode = #tpu.pipeline_mode<synchronous>, transform_indices = @transform_1, window_bounds = array<i64: 1, 128>}, {pipeline_mode = #tpu.pipeline_mode<synchronous>, transform_indices = @transform_2, window_bounds = array<i64: 1, 128>}, {pipeline_mode = #tpu.pipeline_mode<synchronous>, transform_indices = @transform_3, window_bounds = array<i64: 128, 256>}, {pipeline_mode = #tpu.pipeline_mode<synchronous>, transform_indices = @transform_4, window_bounds = array<i64: 1, 256>}, {pipeline_mode = #tpu.pipeline_mode<synchronous>, transform_indices = @transform_5, window_bounds = array<i64: 256, 128>}, {pipeline_mode = #tpu.pipeline_mode<synchronous>, transform_indices = @transform_6, window_bounds = array<i64: 1, 128>}, {transform_indices = @transform_7, window_bounds = array<i64: 32, 128>}]} {
    %c0 = arith.constant 0 : index
    %c0_0 = arith.constant 0 : index
    %0 = vector.load %arg1[%c0, %c0_0] : memref<32x128xf32, #tpu.memory_space<vmem>>, vector<32x128xf32>
    %cst = arith.constant dense<0.000000e+00> : vector<32xf32>
    %1 = vector.multi_reduction <add>, %0, %cst [1] : vector<32x128xf32> to vector<32xf32>
    %2 = vector.shape_cast %1 : vector<32xf32> to vector<32x1xf32>
    %cst_1 = arith.constant 1.280000e+02 : f32
    %3 = vector.broadcast %cst_1 : f32 to vector<32x1xf32>
    %4 = arith.divf %2, %3 : vector<32x1xf32>
    %5 = vector.broadcast %4 : vector<32x1xf32> to vector<32x128xf32>
    %6 = arith.subf %0, %5 : vector<32x128xf32>
    %7 = arith.mulf %6, %6 : vector<32x128xf32>
    %cst_2 = arith.constant dense<0.000000e+00> : vector<32xf32>
    %8 = vector.multi_reduction <add>, %7, %cst_2 [1] : vector<32x128xf32> to vector<32xf32>
    %9 = vector.shape_cast %8 : vector<32xf32> to vector<32x1xf32>
    %cst_3 = arith.constant 1.280000e+02 : f32
    %10 = vector.broadcast %cst_3 : f32 to vector<32x1xf32>
    %11 = arith.divf %9, %10 : vector<32x1xf32>
    %12 = vector.broadcast %4 : vector<32x1xf32> to vector<32x128xf32>
    %13 = arith.subf %0, %12 : vector<32x128xf32>
    %cst_4 = arith.constant 9.99999974E-6 : f32
    %14 = vector.broadcast %cst_4 : f32 to vector<32x1xf32>
    %15 = arith.addf %11, %14 : vector<32x1xf32>
    %16 = math.rsqrt %15 : vector<32x1xf32>
    %17 = vector.broadcast %16 : vector<32x1xf32> to vector<32x128xf32>
    %18 = arith.mulf %13, %17 : vector<32x128xf32>
    %c0_5 = arith.constant 0 : index
    %c0_6 = arith.constant 0 : index
    %19 = vector.load %arg2[%c0_5, %c0_6] : memref<1x128xf32, #tpu.memory_space<vmem>>, vector<1x128xf32>
    %20 = vector.broadcast %19 : vector<1x128xf32> to vector<32x128xf32>
    %21 = arith.mulf %18, %20 : vector<32x128xf32>
    %c0_7 = arith.constant 0 : index
    %c0_8 = arith.constant 0 : index
    %22 = vector.load %arg3[%c0_7, %c0_8] : memref<1x128xf32, #tpu.memory_space<vmem>>, vector<1x128xf32>
    %23 = vector.broadcast %22 : vector<1x128xf32> to vector<32x128xf32>
    %24 = arith.addf %21, %23 : vector<32x128xf32>
    %25 = arith.truncf %24 : vector<32x128xf32> to vector<32x128xbf16>
    %c0_9 = arith.constant 0 : index
    %c0_10 = arith.constant 0 : index
    %26 = vector.load %arg7[%c0_9, %c0_10] : memref<1x128xf32, #tpu.memory_space<vmem>>, vector<1x128xf32>
    %27 = vector.broadcast %26 : vector<1x128xf32> to vector<32x128xf32>
    %28 = arith.addf %0, %27 : vector<32x128xf32>
    %c0_11 = arith.constant 0 : index
    %c0_12 = arith.constant 0 : index
    %29 = vector.load %arg4[%c0_11, %c0_12] : memref<128x256xbf16, #tpu.memory_space<vmem>>, vector<128x256xbf16>
    %cst_13 = arith.constant dense<0.000000e+00> : vector<32x256xf32>
    %30 = tpu.matmul %25, %29, %cst_13 {dimension_numbers = #tpu.dot_dimension_numbers<[1], [0], [0], [1], [0, 0, 1, 1], [], []>} : vector<32x128xbf16>, vector<128x256xbf16>, vector<32x256xf32> -> vector<32x256xf32>
    %c0_14 = arith.constant 0 : index
    %c0_15 = arith.constant 0 : index
    %31 = vector.load %arg5[%c0_14, %c0_15] : memref<1x256xf32, #tpu.memory_space<vmem>>, vector<1x256xf32>
    %32 = vector.broadcast %31 : vector<1x256xf32> to vector<32x256xf32>
    %33 = arith.addf %30, %32 : vector<32x256xf32>
    %34 = arith.mulf %33, %33 : vector<32x256xf32>
    %35 = arith.mulf %33, %34 : vector<32x256xf32>
    %cst_16 = arith.constant 4.471500e-02 : f32
    %36 = vector.broadcast %cst_16 : f32 to vector<32x256xf32>
    %37 = arith.mulf %36, %35 : vector<32x256xf32>
    %38 = arith.addf %33, %37 : vector<32x256xf32>
    %cst_17 = arith.constant 0.797884583 : f32
    %39 = vector.broadcast %cst_17 : f32 to vector<32x256xf32>
    %40 = arith.mulf %39, %38 : vector<32x256xf32>
    %41 = math.tanh %40 : vector<32x256xf32>
    %cst_18 = arith.constant 1.000000e+00 : f32
    %42 = vector.broadcast %cst_18 : f32 to vector<32x256xf32>
    %43 = arith.addf %42, %41 : vector<32x256xf32>
    %cst_19 = arith.constant 5.000000e-01 : f32
    %44 = vector.broadcast %cst_19 : f32 to vector<32x256xf32>
    %45 = arith.mulf %44, %43 : vector<32x256xf32>
    %46 = arith.mulf %33, %45 : vector<32x256xf32>
    %47 = arith.truncf %46 : vector<32x256xf32> to vector<32x256xbf16>
    %c0_20 = arith.constant 0 : index
    %c0_21 = arith.constant 0 : index
    %48 = vector.load %arg6[%c0_20, %c0_21] : memref<256x128xbf16, #tpu.memory_space<vmem>>, vector<256x128xbf16>
    %cst_22 = arith.constant dense<0.000000e+00> : vector<32x128xf32>
    %49 = tpu.matmul %47, %48, %cst_22 {dimension_numbers = #tpu.dot_dimension_numbers<[1], [0], [0], [1], [0, 0, 1, 1], [], []>} : vector<32x256xbf16>, vector<256x128xbf16>, vector<32x128xf32> -> vector<32x128xf32>
    %50 = arith.addf %28, %49 : vector<32x128xf32>
    %c0_23 = arith.constant 0 : index
    %c0_24 = arith.constant 0 : index
    %51 = vector.load %arg8[%c0_23, %c0_24] : memref<32x128xf32, #tpu.memory_space<vmem>>, vector<32x128xf32>
    tpu.vector_store %arg8[%c0_23, %c0_24], %50 {strides = array<i32>} : memref<32x128xf32, #tpu.memory_space<vmem>>, vector<32x128xf32>,
    return
  }
  func.func @transform_0(%arg0: i32) -> (i32, i32) {
    %c0_i32 = arith.constant 0 : i32
    %c0_i32_0 = arith.constant 0 : i32
    return %arg0, %c0_i32 : i32, i32
  }
  func.func @transform_1(%arg0: i32) -> (i32, i32) {
    %c0_i32 = arith.constant 0 : i32
    %c0_i32_0 = arith.constant 0 : i32
    %c0_i32_1 = arith.constant 0 : i32
    return %c0_i32, %c0_i32_0 : i32, i32
  }
  func.func @transform_2(%arg0: i32) -> (i32, i32) {
    %c0_i32 = arith.constant 0 : i32
    %c0_i32_0 = arith.constant 0 : i32
    %c0_i32_1 = arith.constant 0 : i32
    return %c0_i32, %c0_i32_0 : i32, i32
  }
  func.func @transform_3(%arg0: i32) -> (i32, i32) {
    %c0_i32 = arith.constant 0 : i32
    %c0_i32_0 = arith.constant 0 : i32
    %c0_i32_1 = arith.constant 0 : i32
    return %c0_i32, %c0_i32_0 : i32, i32
  }
  func.func @transform_4(%arg0: i32) -> (i32, i32) {
    %c0_i32 = arith.constant 0 : i32
    %c0_i32_0 = arith.constant 0 : i32
    %c0_i32_1 = arith.constant 0 : i32
    return %c0_i32, %c0_i32_0 : i32, i32
  }
  func.func @transform_5(%arg0: i32) -> (i32, i32) {
    %c0_i32 = arith.constant 0 : i32
    %c0_i32_0 = arith.constant 0 : i32
    %c0_i32_1 = arith.constant 0 : i32
    return %c0_i32, %c0_i32_0 : i32, i32
  }
  func.func @transform_6(%arg0: i32) -> (i32, i32) {
    %c0_i32 = arith.constant 0 : i32
    %c0_i32_0 = arith.constant 0 : i32
    %c0_i32_1 = arith.constant 0 : i32
    return %c0_i32, %c0_i32_0 : i32, i32
  }
  func.func @transform_7(%arg0: i32) -> (i32, i32) {
    %c0_i32 = arith.constant 0 : i32
    %c0_i32_0 = arith.constant 0 : i32
    return %arg0, %c0_i32 : i32, i32
  }
}

module attributes {stable_mosaic.version = 11 : i64} {
  func.func @_head_kernel(%arg0: memref<2x128xf32, #tpu.memory_space<vmem>>, %arg1: memref<1x128xf32, #tpu.memory_space<vmem>>, %arg2: memref<1x128xf32, #tpu.memory_space<vmem>>, %arg3: memref<128x512xbf16, #tpu.memory_space<vmem>>, %arg4: memref<1x512xf32, #tpu.memory_space<vmem>>, %arg5: memref<2x512xf32, #tpu.memory_space<vmem>>) attributes {dimension_semantics = [], scalar_prefetch = 0 : i64, scratch_operands = 0 : i64, tpu.core_type = #tpu.core_type<tc>} {
    %c0 = arith.constant 0 : index
    %c0_0 = arith.constant 0 : index
    %0 = vector.load %arg0[%c0, %c0_0] : memref<2x128xf32, #tpu.memory_space<vmem>>, vector<2x128xf32>
    %cst = arith.constant dense<0.000000e+00> : vector<2xf32>
    %1 = vector.multi_reduction <add>, %0, %cst [1] : vector<2x128xf32> to vector<2xf32>
    %2 = vector.shape_cast %1 : vector<2xf32> to vector<2x1xf32>
    %cst_1 = arith.constant 1.280000e+02 : f32
    %3 = vector.broadcast %cst_1 : f32 to vector<2x1xf32>
    %4 = arith.divf %2, %3 : vector<2x1xf32>
    %5 = vector.broadcast %4 : vector<2x1xf32> to vector<2x128xf32>
    %6 = arith.subf %0, %5 : vector<2x128xf32>
    %7 = arith.mulf %6, %6 : vector<2x128xf32>
    %cst_2 = arith.constant dense<0.000000e+00> : vector<2xf32>
    %8 = vector.multi_reduction <add>, %7, %cst_2 [1] : vector<2x128xf32> to vector<2xf32>
    %9 = vector.shape_cast %8 : vector<2xf32> to vector<2x1xf32>
    %cst_3 = arith.constant 1.280000e+02 : f32
    %10 = vector.broadcast %cst_3 : f32 to vector<2x1xf32>
    %11 = arith.divf %9, %10 : vector<2x1xf32>
    %12 = vector.broadcast %4 : vector<2x1xf32> to vector<2x128xf32>
    %13 = arith.subf %0, %12 : vector<2x128xf32>
    %cst_4 = arith.constant 9.99999974E-6 : f32
    %14 = vector.broadcast %cst_4 : f32 to vector<2x1xf32>
    %15 = arith.addf %11, %14 : vector<2x1xf32>
    %16 = math.rsqrt %15 : vector<2x1xf32>
    %17 = vector.broadcast %16 : vector<2x1xf32> to vector<2x128xf32>
    %18 = arith.mulf %13, %17 : vector<2x128xf32>
    %c0_5 = arith.constant 0 : index
    %c0_6 = arith.constant 0 : index
    %19 = vector.load %arg1[%c0_5, %c0_6] : memref<1x128xf32, #tpu.memory_space<vmem>>, vector<1x128xf32>
    %20 = vector.broadcast %19 : vector<1x128xf32> to vector<2x128xf32>
    %21 = arith.mulf %18, %20 : vector<2x128xf32>
    %c0_7 = arith.constant 0 : index
    %c0_8 = arith.constant 0 : index
    %22 = vector.load %arg2[%c0_7, %c0_8] : memref<1x128xf32, #tpu.memory_space<vmem>>, vector<1x128xf32>
    %23 = vector.broadcast %22 : vector<1x128xf32> to vector<2x128xf32>
    %24 = arith.addf %21, %23 : vector<2x128xf32>
    %25 = arith.truncf %24 : vector<2x128xf32> to vector<2x128xbf16>
    %c0_9 = arith.constant 0 : index
    %c0_10 = arith.constant 0 : index
    %26 = vector.load %arg3[%c0_9, %c0_10] : memref<128x512xbf16, #tpu.memory_space<vmem>>, vector<128x512xbf16>
    %cst_11 = arith.constant dense<0.000000e+00> : vector<2x512xf32>
    %27 = tpu.matmul %25, %26, %cst_11 {dimension_numbers = #tpu.dot_dimension_numbers<[1], [0], [0], [1], [0, 0, 1, 1], [], []>} : vector<2x128xbf16>, vector<128x512xbf16>, vector<2x512xf32> -> vector<2x512xf32>
    %c0_12 = arith.constant 0 : index
    %c0_13 = arith.constant 0 : index
    %28 = vector.load %arg4[%c0_12, %c0_13] : memref<1x512xf32, #tpu.memory_space<vmem>>, vector<1x512xf32>
    %29 = vector.broadcast %28 : vector<1x512xf32> to vector<2x512xf32>
    %30 = arith.addf %27, %29 : vector<2x512xf32>
    %31 = arith.mulf %30, %30 : vector<2x512xf32>
    %cst_14 = arith.constant dense<0.000000e+00> : vector<2xf32>
    %32 = vector.multi_reduction <add>, %31, %cst_14 [1] : vector<2x512xf32> to vector<2xf32>
    %33 = vector.shape_cast %32 : vector<2xf32> to vector<2x1xf32>
    %cst_15 = arith.constant 1.000000e-24 : f32
    %34 = vector.broadcast %cst_15 : f32 to vector<2x1xf32>
    %35 = arith.maximumf %33, %34 : vector<2x1xf32>
    %36 = math.rsqrt %35 : vector<2x1xf32>
    %37 = vector.broadcast %36 : vector<2x1xf32> to vector<2x512xf32>
    %38 = arith.mulf %30, %37 : vector<2x512xf32>
    %c0_16 = arith.constant 0 : index
    %c0_17 = arith.constant 0 : index
    %39 = vector.load %arg5[%c0_16, %c0_17] : memref<2x512xf32, #tpu.memory_space<vmem>>, vector<2x512xf32>
    tpu.vector_store %arg5[%c0_16, %c0_17], %38 {strides = array<i32>} : memref<2x512xf32, #tpu.memory_space<vmem>>, vector<2x512xf32>,
    return
  }
}

</mosaic_0001>

<bundles_post_ra>
// kernel: conch_vision_embedding_forward.10
= control target key start
LH: loop header
LB: loop body
LE: loop exit
PB: predicated region body
PF: predicated region fallthrough
CT: control target
= control target key end

     0   :  { %s649_s12 = smov 0   ;;  %s651_s13 = smov 0   ;;  %s731_s0 = inlined_call_operand.vmem [shape: f32[32,192], index: 0, kind: input, shape index: {}]   ;;  %s732_s1 = inlined_call_operand.vmem [shape: bf16[192,128], index: 1, kind: input, shape index: {}]   ;;  %s733_s2 = inlined_call_operand.vmem [shape: f32[1,128], index: 2, kind: input, shape index: {}]   ;;  %s734_s3 = inlined_call_operand.vmem [shape: f32[32,128], index: 3, kind: output, shape index: {}]  }
   0x1   :  { %s653_s14 = smov 0  }
   0x2 LB: > { %s32_s15 = sadd.s32 1, %s622_s13  ;;  %p544_p0 = scmp.ge.s32.totalorder %s626_s14, 1  ;;  %s626_s14 = sphi %s653_s14, %s13_s14   ;;  %s622_s13 = sphi %s651_s13, %s736_s13   ;;  %s618_s12 = sphi %s649_s12, %s735_s12  }
   0x3   : > { %p34_p1 = scmp.ge.s32.totalorder %s32_s15, 2  ;;  %p191_p2 = scmp.lt.s32.totalorder %s626_s14, 3 }
   0x5   : > { %s738_s15 = smov (%p34_p1, %s32_s15), 0  ;;  %p192_p3 = pnand %p544_p0, %p191_p2 }
   0x6   : > { %v592_v0 = vld [vmem:[%s732_s1] sm:$0xff] (!%p192_p3)   ;;  %v628_v1 = vmov (!%p192_p3), 0   ;;  %s545_s18 = sshll.u32 (!%p192_p3), %s618_s12, 1  ;;  %v593_v2 = vld [vmem:[%s732_s1 + $0x8] sm:$0xff] (!%p192_p3)   ;;  %v594_v3 = vld [vmem:[%s732_s1 + $0x10] sm:$0xff] (!%p192_p3)   ;;  %vm377_vm0 = vcmask (!%p192_p3), 523264  }
   0x7   : > { %195 = sbr.rel (%p192_p3) target bundleno = 272 (0x110), region = 32  ;;  %381 = vmatprep.subr.bf16.mxu0 (!%p192_p3), %v628_v1  ;;  %p236_p4 = scmp.lt.s32.totalorder (!%p192_p3), %s545_s18, 3  ;;  %v595_v4 = vld [vmem:[%s732_s1 + $0x18] sm:$0xff] (!%p192_p3)   ;;  %v596_v8 = vld [vmem:[%s732_s1 + $0x20] sm:$0xff] (!%p192_p3)   ;;  %v597_v9 = vld [vmem:[%s732_s1 + $0x28] sm:$0xff] (!%p192_p3)  }
   0x8   : > { %382 = vmatpush1.bf16.msra.mxu0 (!%p192_p3), %v592_v0  ;;  %v598_v10 = vld [vmem:[%s732_s1 + $0x30] sm:$0xff] (!%p192_p3)   ;;  %v599_v11 = vld [vmem:[%s732_s1 + $0x38] sm:$0xff] (!%p192_p3)   ;;  %v600_v12 = vld [vmem:[%s732_s1 + $0x40] sm:$0xff] (!%p192_p3)  }
   0x9   : > { %383 = vmatprep.subr.bf16.mxu0 (!%p192_p3), %v628_v1  ;;  %v601_v13 = vld [vmem:[%s732_s1 + $0x48] sm:$0xff] (!%p192_p3)   ;;  %v602_v14 = vld [vmem:[%s732_s1 + $0x50] sm:$0xff] (!%p192_p3)   ;;  %v603_v15 = vld [vmem:[%s732_s1 + $0x58] sm:$0xff] (!%p192_p3)  }
   0xa   : > { %v550_v19 = vld [vmem:[%s733_s2] ss:$0 sm:$0xff] (!%p192_p3) }
   0xc   : > { %384 = vmatpush1.bf16.msra.mxu0 (!%p192_p3), %v593_v2 }
   0xd   : > { %385 = vmatprep.subr.bf16.mxu0 (!%p192_p3), %v628_v1 }
   0xe   : > { %s740_s18 = smov (!%p236_p4, %s545_s18), 3 }
   0xf   : > { %s566_s23 = sshll.u32 %s740_s18, 4  ;;  %s549_s22 = sshll.u32 %s740_s18, 3 }
  0x10   : > { %s682_s26 = scalar_lea.vmem %s731_s0, %s566_s23  ;;  %386 = vmatpush1.bf16.msra.mxu0 %v594_v3  ;;  %s265_s28 = scalar_lea.vmem %s734_s3, %s549_s22 }
  0x11   : > { %387 = vmatprep.subr.bf16.mxu0 %v628_v1  ;;  %v269_v5 = vld [vmem:[%s682_s26 + $0x8] sm:$0xff]  ;;  %v271_v6 = vld [vmem:[%s682_s26 + $0x18] sm:$0xff]  ;;  %v268_v16 = vld [vmem:[%s682_s26] sm:$0xff] }
  0x12   : > { %v273_v7 = vpack.c.bf16 %v271_v6, %v269_v5  ;;  %v270_v17 = vld [vmem:[%s682_s26 + $0x10] sm:$0xff] }
  0x13   : > { %v272_v18 = vpack.c.bf16 %v270_v17, %v268_v16 }
  0x14   : > { %388 = vmatpush1.bf16.msra.mxu0 %v595_v4  ;;  %563 = vmatprep.mubr.msk.bf16.mxu0 %vm377_vm0, %v273_v7 }
  0x15   : > { %389 = vmatprep.subr.bf16.mxu0 %v628_v1 }
  0x18   : > { %390 = vmatpush1.bf16.msra.mxu0 %v596_v8 }
  0x19   : > { %391 = vmatprep.subr.bf16.mxu0 %v628_v1 }
  0x1c   : > { %392 = vmatpush1.bf16.msra.mxu0 %v597_v9 }
  0x1d   : > { %393 = vmatprep.subr.bf16.mxu0 %v628_v1 }
  0x20   : > { %394 = vmatpush1.bf16.msra.mxu0 %v598_v10 }
  0x21   : > { %395 = vmatprep.subr.bf16.mxu0 %v628_v1 }
  0x24   : > { %396 = vmatpush1.bf16.msra.mxu0 %v599_v11 }
  0x25   : > { %397 = vmatprep.subr.bf16.mxu0 %v628_v1 }
  0x28   : > { %398 = vmatpush1.bf16.msra.mxu0 %v600_v12 }
  0x29   : > { %399 = vmatprep.subr.bf16.mxu0 %v628_v1 }
  0x2c   : > { %400 = vmatpush1.bf16.msra.mxu0 %v601_v13 }
  0x2d   : > { %401 = vmatprep.subr.bf16.mxu0 %v628_v1 }
  0x30   : > { %402 = vmatpush1.bf16.msra.mxu0 %v602_v14 }
  0x31   : > { %403 = vmatprep.subr.bf16.mxu0 %v628_v1 }
  0x34   : > { %404 = vmatpush1.bf16.msra.mxu0 %v603_v15 }
  0x37   : > { %414 = vmatmul.mubr.bf16.vlgmr.msra.gmra.mrb[0].mxu0 %v272_v18 }
 0x10a   : > { %v415_v20 = vpop.f32.mrb[0].mxu0 }
 0x10b   : > { %v416_v21 = vadd.f32 %v550_v19, %v415_v20  ;;  %v417_v22 = vpop.f32.mrb[1].mxu0 }
 0x10c   : > { %v418_v23 = vpop.f32.mrb[2].mxu0 }
 0x10d   : > { %422 = vst [vmem:[%s265_s28] sm:$0xff] %v416_v21  ;;  %v419_v24 = vadd.f32 %v550_v19, %v418_v23  ;;  %v420_v25 = vpop.f32.mrb[3].mxu0 }
 0x10f   : > { %423 = vst [vmem:[%s265_s28 + $0x8] sm:$0xff] %v419_v24 }
 0x110 PF: > { %s13_s14 = sadd.s32 1, %s626_s14   ;;  %s735_s12 = smov %s622_s13 }
 0x111   : > { %p10_p5 = scmp.ge.s32.totalorder %s13_s14, 4   ;;  %s736_s13 = smov %s738_s15 }
 0x113   :  { %12 = sbr.rel (!%p10_p5) target bundleno = 2 (0x2), region = 68 }

// kernel: conch_vision_embedding_forward.13
= control target key start
LH: loop header
LB: loop body
LE: loop exit
PB: predicated region body
PF: predicated region fallthrough
CT: control target
= control target key end

     0   :  { %s733_s15 = smov 0   ;;  %s735_s16 = smov 0   ;;  %s800_s0 = inlined_call_operand.vmem [shape: bf16[64,128], index: 0, kind: input, shape index: {}]   ;;  %s801_s1 = inlined_call_operand.vmem [shape: bf16[128,128], index: 1, kind: input, shape index: {}]   ;;  %s802_s2 = inlined_call_operand.vmem [shape: f32[1,128], index: 2, kind: input, shape index: {}]   ;;  %s803_s3 = inlined_call_operand.vmem [shape: f32[64,128], index: 3, kind: input, shape index: {}]   ;;  %s804_s4 = inlined_call_operand.vmem [shape: f32[64,128], index: 4, kind: output, shape index: {}]  }
   0x1   :  { %s737_s17 = smov 0  }
   0x2 LB: > { %s33_s18 = sadd.s32 1, %s702_s16  ;;  %p600_p0 = scmp.ge.s32.totalorder %s706_s17, 1  ;;  %s706_s17 = sphi %s737_s17, %s14_s17   ;;  %s702_s16 = sphi %s735_s16, %s806_s16   ;;  %s698_s15 = sphi %s733_s15, %s805_s15  }
   0x3   : > { %p35_p1 = scmp.ge.s32.totalorder %s33_s18, 2  ;;  %p229_p2 = scmp.lt.s32.totalorder %s706_s17, 3 }
   0x5   : > { %s808_s18 = smov (%p35_p1, %s33_s18), 0  ;;  %p230_p3 = pnand %p600_p0, %p229_p2 }
   0x6   : > { %v674_v0 = vld [vmem:[%s801_s1] sm:$0xff] (!%p230_p3)   ;;  %s601_s21 = sshll.u32 (!%p230_p3), %s698_s15, 2  ;;  %v675_v1 = vld [vmem:[%s801_s1 + $0x8] sm:$0xff] (!%p230_p3)   ;;  %v676_v2 = vld [vmem:[%s801_s1 + $0x10] sm:$0xff] (!%p230_p3)  }
   0x7   : > { %233 = sbr.rel (%p230_p3) target bundleno = 259 (0x103), region = 36  ;;  %p281_p4 = scmp.lt.s32.totalorder (!%p230_p3), %s601_s21, 7  ;;  %630 = vmatprep.subr.bf16.mxu0 (!%p230_p3), %v674_v0  ;;  %v677_v3 = vld [vmem:[%s801_s1 + $0x18] sm:$0xff] (!%p230_p3)   ;;  %v678_v5 = vld [vmem:[%s801_s1 + $0x20] sm:$0xff] (!%p230_p3)   ;;  %v679_v6 = vld [vmem:[%s801_s1 + $0x28] sm:$0xff] (!%p230_p3)  }
   0x8   : > { %631 = vmatpush3.bf16.msra.mxu0 (!%p230_p3), %v674_v0  ;;  %v680_v7 = vld [vmem:[%s801_s1 + $0x30] sm:$0xff] (!%p230_p3)   ;;  %v681_v8 = vld [vmem:[%s801_s1 + $0x38] sm:$0xff] (!%p230_p3)   ;;  %v607_v10 = vld [vmem:[%s802_s2] ss:$0 sm:$0xff] (!%p230_p3) }
   0x9   : > { %632 = vmatprep.subr.bf16.mxu0 (!%p230_p3), %v675_v1 }
   0xc   : > { %633 = vmatpush3.bf16.msra.mxu0 (!%p230_p3), %v675_v1 }
   0xd   : > { %634 = vmatprep.subr.bf16.mxu0 (!%p230_p3), %v676_v2 }
   0xe   : > { %s810_s21 = smov (!%p281_p4, %s601_s21), 7 }
   0xf   : > { %s602_s26 = sshll.u32 %s810_s21, 2  ;;  %s604_s14 = sshll.u32 %s810_s21, 3 }
  0x10   : > { %s287_s29 = scalar_lea.vmem %s800_s0, %s602_s26  ;;  %635 = vmatpush3.bf16.msra.mxu0 %v676_v2  ;;  %s308_s20 = scalar_lea.vmem %s803_s3, %s604_s14 }
  0x11   : > { %v682_v4 = vld [vmem:[%s287_s29] sm:$0xff]   ;;  %636 = vmatprep.subr.bf16.mxu0 %v677_v3  ;;  %v683_v9 = vld [vmem:[%s287_s29 + $0x8] sm:$0xff]   ;;  %v458_v12 = vld [vmem:[%s308_s20 + $0x10] sm:$0xff]  ;;  %s317_s21 = scalar_lea.vmem %s804_s4, %s604_s14 }
  0x12   : > { %646 = vmatprep.mubr.bf16.mxu0 %v682_v4  ;;  %v456_v15 = vld [vmem:[%s308_s20] sm:$0xff]  ;;  %v459_v18 = vld [vmem:[%s308_s20 + $0x18] sm:$0xff]  ;;  %v457_v22 = vld [vmem:[%s308_s20 + $0x8] sm:$0xff] }
  0x14   : > { %637 = vmatpush3.bf16.msra.mxu0 %v677_v3 }
  0x15   : > { %638 = vmatprep.subr.bf16.mxu0 %v678_v5 }
  0x18   : > { %639 = vmatpush3.bf16.msra.mxu0 %v678_v5 }
  0x19   : > { %640 = vmatprep.subr.bf16.mxu0 %v679_v6 }
  0x1c   : > { %641 = vmatpush3.bf16.msra.mxu0 %v679_v6 }
  0x1d   : > { %642 = vmatprep.subr.bf16.mxu0 %v680_v7 }
  0x20   : > { %643 = vmatpush3.bf16.msra.mxu0 %v680_v7 }
  0x21   : > { %644 = vmatprep.subr.bf16.mxu0 %v681_v8 }
  0x24   : > { %645 = vmatpush3.bf16.msra.mxu0 %v681_v8 }
  0x27   : > { %647 = vmatmul.mubr.bf16.vlgmr.msra.gmra.mrb[0].mxu0 %v683_v9 }
  0xfa   : > { %v648_v11 = vpop.f32.mrb[0].mxu0 }
  0xfb   : > { %v450_v13 = vadd.f32 %v648_v11, %v607_v10  ;;  %v441_v14 = vpop.f32.mrb[1].mxu0 }
  0xfc   : > { %v442_v16 = vadd.f32 %v607_v10, %v441_v14  ;;  %v649_v17 = vpop.f32.mrb[2].mxu0 }
  0xfd   : > { %v462_v19 = vadd.f32 %v458_v12, %v450_v13  ;;  %v453_v20 = vadd.f32 %v649_v17, %v607_v10  ;;  %v444_v21 = vpop.f32.mrb[3].mxu0 }
  0xfe   : > { %v460_v23 = vadd.f32 %v456_v15, %v442_v16  ;;  %v445_v24 = vadd.f32 %v607_v10, %v444_v21 }
  0xff   : > { %v463_v25 = vadd.f32 %v459_v18, %v453_v20  ;;  %466 = vst [vmem:[%s317_s21 + $0x10] sm:$0xff] %v462_v19 }
 0x100   : > { %464 = vst [vmem:[%s317_s21] sm:$0xff] %v460_v23  ;;  %v461_v26 = vadd.f32 %v457_v22, %v445_v24 }
 0x101   : > { %467 = vst [vmem:[%s317_s21 + $0x18] sm:$0xff] %v463_v25 }
 0x102   : > { %465 = vst [vmem:[%s317_s21 + $0x8] sm:$0xff] %v461_v26 }
 0x103 PF: > { %s14_s17 = sadd.s32 1, %s706_s17   ;;  %s805_s15 = smov %s702_s16 }
 0x104   : > { %p11_p5 = scmp.ge.s32.totalorder %s14_s17, 4   ;;  %s806_s16 = smov %s808_s18 }
 0x106   :  { %13 = sbr.rel (!%p11_p5) target bundleno = 2 (0x2), region = 75 }

// kernel: conch_vision_embedding_forward.11
= control target key start
LH: loop header
LB: loop body
LE: loop exit
PB: predicated region body
PF: predicated region fallthrough
CT: control target
= control target key end

     0   :  { %s1061_s18 = smov 0   ;;  %s1063_s19 = smov 0   ;;  %s1209_s0 = inlined_call_operand.vmem [shape: f32[64,128], index: 0, kind: input, shape index: {}]   ;;  %s1210_s1 = inlined_call_operand.vmem [shape: f32[1,128], index: 1, kind: input, shape index: {}]   ;;  %s1211_s2 = inlined_call_operand.vmem [shape: f32[1,128], index: 2, kind: input, shape index: {}]   ;;  %s1212_s3 = inlined_call_operand.vmem [shape: bf16[128,384], index: 3, kind: input, shape index: {}]   ;;  %s1213_s4 = inlined_call_operand.vmem [shape: f32[1,384], index: 4, kind: input, shape index: {}]   ;;  %s1214_s5 = inlined_call_operand.vmem [shape: bf16[64,384], index: 5, kind: output, shape index: {}]  }
   0x1   :  { %s1065_s20 = smov 0  }
   0x2 LB: > { %s34_s21 = sadd.s32 1, %s1024_s19  ;;  %p861_p0 = scmp.ge.s32.totalorder %s1028_s20, 1  ;;  %s1028_s20 = sphi %s1065_s20, %s15_s20   ;;  %s1024_s19 = sphi %s1063_s19, %s1216_s19   ;;  %s1020_s18 = sphi %s1061_s18, %s1215_s18  }
   0x3   : > { %p36_p1 = scmp.ge.s32.totalorder %s34_s21, 2  ;;  %p243_p2 = scmp.lt.s32.totalorder %s1028_s20, 3 }
   0x5   : > { %s1218_s21 = smov (%p36_p1, %s34_s21), 0  ;;  %p244_p3 = pnand %p861_p0, %p243_p2 }
   0x6   : > { %s862_s22 = sshll.u32 (!%p244_p3), %s1020_s18, 2  ;;  %v966_v4 = vld [vmem:[%s1212_s3 + $0x4] ss:$12 sps:$4 sm:$0xff] (!%p244_p3)   ;;  %v968_v5 = vld [vmem:[%s1212_s3] ss:$12 sps:$4 sm:$0xff] (!%p244_p3)   ;;  %v1030_v39 = vmov (!%p244_p3), 0  }
   0x7   : > { %247 = sbr.rel (%p244_p3) target bundleno = 563 (0x233), region = 40  ;;  %p294_p4 = scmp.lt.s32.totalorder (!%p244_p3), %s862_s22, 7  ;;  %v969_v6 = vld [vmem:[%s1212_s3 + $0x1c] ss:$12 sps:$4 sm:$0xff] (!%p244_p3)   ;;  %582 = vmatprep.subr.bf16.mxu0 (!%p244_p3), %v966_v4  ;;  %v972_v24 = vld [vmem:[%s1212_s3 + $0x18] ss:$12 sps:$4 sm:$0xff] (!%p244_p3)   ;;  %614 = vmatprep.mubr.bf16.mxu0 (!%p244_p3), %v1030_v39 }
   0x8   : > { %v971_v7 = vld [vmem:[%s1212_s3 + $0x8] ss:$12 sps:$4 sm:$0xff] (!%p244_p3)   ;;  %583 = vmatpush1.bf16.msra.mxu0 (!%p244_p3), %v968_v5  ;;  %v975_v26 = vld [vmem:[%s1212_s3 + $0x20] ss:$12 sps:$4 sm:$0xff] (!%p244_p3)   ;;  %v976_v27 = vld [vmem:[%s1212_s3 + $0x30] ss:$12 sps:$4 sm:$0xff] (!%p244_p3)  }
   0x9   : > { %920 = vmatprep.subr.bf16.mxu1 (!%p244_p3), %v971_v7  ;;  %584 = vmatprep.subr.bf16.mxu0 (!%p244_p3), %v969_v6  ;;  %v973_v25 = vld [vmem:[%s1212_s3 + $0x34] ss:$12 sps:$4 sm:$0xff] (!%p244_p3)   ;;  %v977_v28 = vld [vmem:[%s1212_s3 + $0x4c] ss:$12 sps:$4 sm:$0xff] (!%p244_p3)   ;;  %v981_v31 = vld [vmem:[%s1212_s3 + $0x64] ss:$12 sps:$4 sm:$0xff] (!%p244_p3)  }
   0xa   : > { %921 = vmatpush3.bf16.msra.mxu1 (!%p244_p3), %v971_v7  ;;  %v979_v29 = vld [vmem:[%s1212_s3 + $0x38] ss:$12 sps:$4 sm:$0xff] (!%p244_p3)   ;;  %v980_v30 = vld [vmem:[%s1212_s3 + $0x48] ss:$12 sps:$4 sm:$0xff] (!%p244_p3)   ;;  %v983_v32 = vld [vmem:[%s1212_s3 + $0x50] ss:$12 sps:$4 sm:$0xff] (!%p244_p3)  }
   0xb   : > { %922 = vmatprep.subr.bf16.mxu1 (!%p244_p3), %v975_v26  ;;  %v984_v33 = vld [vmem:[%s1212_s3 + $0x60] ss:$12 sps:$4 sm:$0xff] (!%p244_p3)   ;;  %v985_v34 = vld [vmem:[%s1212_s3 + $0x7c] ss:$12 sps:$4 sm:$0xff] (!%p244_p3)   ;;  %v988_v36 = vld [vmem:[%s1212_s3 + $0x78] ss:$12 sps:$4 sm:$0xff] (!%p244_p3)  }
   0xc   : > { %585 = vmatpush1.bf16.msra.mxu0 (!%p244_p3), %v972_v24  ;;  %v987_v35 = vld [vmem:[%s1212_s3 + $0x68] ss:$12 sps:$4 sm:$0xff] (!%p244_p3)   ;;  %v991_v38 = vld [vmem:[%s1212_s3 + $0x80] ss:$12 sps:$4 sm:$0xff] (!%p244_p3)   ;;  %v992_v40 = vld [vmem:[%s1212_s3 + $0x90] ss:$12 sps:$4 sm:$0xff] (!%p244_p3)  }
   0xd   : > { %586 = vmatprep.subr.bf16.mxu0 (!%p244_p3), %v973_v25  ;;  %v989_v37 = vld [vmem:[%s1212_s3 + $0x94] ss:$12 sps:$4 sm:$0xff] (!%p244_p3)   ;;  %v993_v41 = vld [vmem:[%s1212_s3 + $0xac] ss:$12 sps:$4 sm:$0xff] (!%p244_p3)   ;;  %v997_v44 = vld [vmem:[%s1212_s3 + $0xb0] ss:$12 sps:$4 sm:$0xff] (!%p244_p3)  }
   0xe   : > { %s1220_s22 = smov (!%p294_p4, %s862_s22), 7  ;;  %923 = vmatpush3.bf16.msra.mxu1 %v975_v26  ;;  %v995_v42 = vld [vmem:[%s1212_s3 + $0x98] ss:$12 sps:$4 sm:$0xff]   ;;  %v996_v43 = vld [vmem:[%s1212_s3 + $0xa8] ss:$12 sps:$4 sm:$0xff]  }
   0xf   : > { %s863_s23 = sshll.u32 %s1220_s22, 3  ;;  %924 = vmatprep.subr.bf16.mxu1 %v979_v29  ;;  %v866_v59 = vld [vmem:[%s1210_s1] ss:$0 sm:$0xff]  ;;  %s940_s14 = smul.u32 12, %s1220_s22 }
  0x10   : > { %s300_s26 = scalar_lea.vmem %s1209_s0, %s863_s23  ;;  %587 = vmatpush1.bf16.msra.mxu0 %v976_v27 }
  0x11   : > { %v332_v0 = vld [vmem:[%s300_s26] sm:$0xff]  ;;  %v334_v1 = vld [vmem:[%s300_s26 + $0x10] sm:$0xff]  ;;  %v333_v2 = vld [vmem:[%s300_s26 + $0x8] sm:$0xff]  ;;  %588 = vmatprep.subr.bf16.mxu0 %v977_v28  ;;  %s1190_s17 = scalar_lea.vmem %s1214_s5, %s940_s14 }
  0x12   : > { %336 = vadd.xlane.f32.xlu0 %v332_v0  ;;  %340 = vadd.xlane.f32.xlu1 %v334_v1  ;;  %v335_v3 = vld [vmem:[%s300_s26 + $0x18] sm:$0xff] }
  0x13   : > { %925 = vmatpush3.bf16.msra.mxu1 %v979_v29 }
  0x14   : > { %589 = vmatpush1.bf16.msra.mxu0 %v980_v30  ;;  %926 = vmatprep.subr.bf16.mxu1 %v983_v32 }
  0x15   : > { %590 = vmatprep.subr.bf16.mxu0 %v981_v31 }
  0x16   : > { %338 = vadd.xlane.f32.xlu0 %v333_v2  ;;  %342 = vadd.xlane.f32.xlu1 %v335_v3 }
  0x17   : > { %927 = vmatpush3.bf16.msra.mxu1 %v983_v32 }
  0x18   : > { %591 = vmatpush1.bf16.msra.mxu0 %v984_v33  ;;  %928 = vmatprep.subr.bf16.mxu1 %v987_v35 }
  0x19   : > { %592 = vmatprep.subr.bf16.mxu0 %v985_v34 }
  0x1b   : > { %929 = vmatpush3.bf16.msra.mxu1 %v987_v35 }
  0x1c   : > { %593 = vmatpush1.bf16.msra.mxu0 %v988_v36  ;;  %930 = vmatprep.subr.bf16.mxu1 %v991_v38 }
  0x1d   : > { %594 = vmatprep.subr.bf16.mxu0 %v989_v37 }
  0x1f   : > { %931 = vmatpush3.bf16.msra.mxu1 %v991_v38 }
  0x20   : > { %595 = vmatpush1.bf16.msra.mxu0 %v992_v40  ;;  %932 = vmatprep.subr.bf16.mxu1 %v995_v42 }
  0x21   : > { %596 = vmatprep.subr.bf16.mxu0 %v993_v41 }
  0x23   : > { %933 = vmatpush3.bf16.msra.mxu1 %v995_v42 }
  0x24   : > { %597 = vmatpush1.bf16.msra.mxu0 %v996_v43  ;;  %934 = vmatprep.subr.bf16.mxu1 %v997_v44 }
  0x27   : > { %935 = vmatpush3.bf16.msra.mxu1 %v997_v44 }
  0x9f   : > { %v337_v8 = vpop.xlane.xlu0 %336  ;;  %v341_v9 = vpop.xlane.xlu1 %340 }
  0xa0   : > { %v345_v10 = vmul.f32 0.0078125, %v337_v8  ;;  %v347_v11 = vmul.f32 0.0078125, %v341_v9 }
  0xa2   : > { %v1097_v12 = vsub.f32 %v332_v0, %v345_v10  ;;  %v1099_v13 = vsub.f32 %v334_v1, %v347_v11  ;;  %v867_v0 = vld [vmem:[%s1211_s2] ss:$0 sm:$0xff] }
  0xa3   : > { %v339_v14 = vpop.xlane.xlu0 %338  ;;  %v343_v15 = vpop.xlane.xlu1 %342 }
  0xa4   : > { %v346_v16 = vmul.f32 0.0078125, %v339_v14  ;;  %v353_v17 = vmul.f32 %v1097_v12, %v1097_v12  ;;  %v348_v18 = vmul.f32 0.0078125, %v343_v15  ;;  %v355_v21 = vmul.f32 %v1099_v13, %v1099_v13 }
  0xa5   : > { %v439_v14 = vlaneseq }
  0xa6   : > { %v1103_v19 = vsub.f32 %v333_v2, %v346_v16  ;;  %357 = vadd.xlane.f32.xlu0 %v353_v17  ;;  %v1105_v20 = vsub.f32 %v335_v3, %v348_v18  ;;  %v437_v16 = vld [vmem:[%s1213_s4] sm:$0x7] }
  0xa8   : > { %v354_v22 = vmul.f32 %v1103_v19, %v1103_v19  ;;  %v356_v23 = vmul.f32 %v1105_v20, %v1105_v20 }
  0xaa   : > { %361 = vadd.xlane.f32.xlu0 %v355_v21  ;;  %359 = vadd.xlane.f32.xlu1 %v354_v22 }
  0xae   : > { %363 = vadd.xlane.f32.xlu1 %v356_v23 }
 0x133   : > { %v358_v45 = vpop.xlane.xlu0 %357 }
 0x134   : > { %v365_v46 = vmul.f32 0.0078125, %v358_v45 }
 0x136   : > { %v369_v47 = vadd.f32 1e-05, %v365_v46 }
 0x137   : > { %v360_v48 = vpop.xlane.xlu1 %359  ;;  %v362_v49 = vpop.xlane.xlu0 %361 }
 0x138   : > { %998 = vrsqrt.f32 %v369_v47  ;;  %v366_v50 = vmul.f32 0.0078125, %v360_v48  ;;  %v367_v51 = vmul.f32 0.0078125, %v362_v49 }
 0x13a   : > { %v370_v52 = vadd.f32 1e-05, %v366_v50  ;;  %v371_v53 = vadd.f32 1e-05, %v367_v51 }
 0x13b   : > { %v364_v54 = vpop.xlane.xlu1 %363 }
 0x13c   : > { %1000 = vrsqrt.f32 %v370_v52  ;;  %v368_v55 = vmul.f32 0.0078125, %v364_v54 }
 0x13d   : > { %1002 = vrsqrt.f32 %v371_v53 }
 0x13e   : > { %v372_v56 = vadd.f32 1e-05, %v368_v55 }
 0x140   : > { %1004 = vrsqrt.f32 %v372_v56 }
 0x142   : > { %v999_v57 = vpop.eup %998 }
 0x143   : > { %v377_v58 = vmul.f32 %v999_v57, %v1097_v12 }
 0x145   : > { %v388_v63 = vmul.f32 %v866_v59, %v377_v58 }
 0x146   : > { %v1001_v60 = vpop.eup %1000 }
 0x147   : > { %v1003_v61 = vpop.eup %1002  ;;  %v378_v62 = vmul.f32 %v1001_v60, %v1103_v19  ;;  %v399_v4 = vadd.f32 %v867_v0, %v388_v63 }
 0x148   : > { %v379_v1 = vmul.f32 %v1003_v61, %v1099_v13  ;;  %v440_v13 = vshrl.u32 %v439_v14, 7 }
 0x149   : > { %v389_v2 = vmul.f32 %v866_v59, %v378_v62 }
 0x14a   : > { %v1005_v3 = vpop.eup %1004  ;;  %v390_v7 = vmul.f32 %v866_v59, %v379_v1  ;;  %v441_v15 = vsub.s32 0, %v440_v13  ;;  %v445_v17 = vsub.s32 1, %v440_v13 }
 0x14b   : > { %v400_v5 = vadd.f32 %v867_v0, %v389_v2  ;;  %v380_v6 = vmul.f32 %v1005_v3, %v1105_v20  ;;  %v449_v20 = vsub.s32 2, %v440_v13 }
 0x14c   : > { %v401_v10 = vadd.f32 %v867_v0, %v390_v7  ;;  %v442_v18 = vrot.slane %v437_v16, %v441_v15  ;;  %v446_v19 = vrot.slane %v437_v16, %v445_v17 }
 0x14d   : > { %v403_v8 = vpack.c.bf16 %v400_v5, %v399_v4  ;;  %v391_v9 = vmul.f32 %v866_v59, %v380_v6  ;;  %v450_v26 = vrot.slane %v437_v16, %v449_v20 }
 0x14f   : > { %615 = vmatmul.mubr.bf16.vlgmr.msra.gmra.mrb[0].mxu0 %v403_v8  ;;  %936 = vmatprep.mubr.bf16.mxu1 %v403_v8  ;;  %v402_v11 = vadd.f32 %v867_v0, %v391_v9 }
 0x150   : > { %624 = vmatprep.mubr.bf16.mxu0 %v1030_v39 }
 0x151   : > { %v404_v12 = vpack.c.bf16 %v402_v11, %v401_v10 }
 0x153   : > { %937 = vmatmul.mubr.bf16.vlgmr.msra.gmra.mrb[0].mxu1 %v404_v12 }
 0x157   : > { %625 = vmatmul.mubr.bf16.gmra.mrb[4].mxu0 %v404_v12 }
 0x222   : > { %v616_v21 = vpop.f32.mrb[0].mxu0 }
 0x223   : > { %v617_v22 = vadd.f32 %v616_v21, %v442_v18  ;;  %v618_v23 = vpop.f32.mrb[1].mxu0 }
 0x224   : > { %v619_v24 = vadd.f32 %v618_v23, %v446_v19  ;;  %v620_v25 = vpop.f32.mrb[2].mxu0 }
 0x225   : > { %v621_v27 = vadd.f32 %v620_v25, %v442_v18  ;;  %v622_v28 = vpop.f32.mrb[3].mxu0 }
 0x226   : > { %v902_v29 = vpack.c.bf16 %v619_v24, %v617_v22  ;;  %v623_v30 = vadd.f32 %v622_v28, %v446_v19  ;;  %v938_v31 = vpop.f32.mrb[0].mxu1 }
 0x227   : > { %v669_v32 = vpop.f32.mrb[1].mxu1  ;;  %v678_v36 = vadd.f32 %v938_v31, %v450_v26 }
 0x228   : > { %724 = vst [vmem:[%s1190_s17] sm:$0xff] %v902_v29  ;;  %v904_v33 = vpack.c.bf16 %v623_v30, %v621_v27  ;;  %v670_v34 = vadd.f32 %v669_v32, %v450_v26  ;;  %v939_v35 = vpop.f32.mrb[2].mxu1 }
 0x229   : > { %v672_v37 = vpop.f32.mrb[3].mxu1  ;;  %v681_v39 = vadd.f32 %v939_v35, %v450_v26  ;;  %v907_v47 = vpack.c.bf16 %v678_v36, %v678_v36 }
 0x22a   : > { %726 = vst [vmem:[%s1190_s17 + $0xc] sm:$0xff] %v904_v33  ;;  %v903_v38 = vpack.c.bf16 %v670_v34, %v670_v34  ;;  %v673_v40 = vadd.f32 %v672_v37, %v450_v26  ;;  %v626_v41 = vpop.f32.mrb[4].mxu0 }
 0x22b   : > { %v627_v42 = vadd.f32 %v626_v41, %v442_v18  ;;  %v628_v43 = vpop.f32.mrb[5].mxu0  ;;  %v909_v50 = vpack.c.bf16 %v681_v39, %v681_v39  ;;  %729 = vst [vmem:[%s1190_s17 + $0x20] sm:$0xf] %v907_v47 }
 0x22c   : > { %725 = vst [vmem:[%s1190_s17 + $0x8] sm:$0xf] %v903_v38  ;;  %v905_v44 = vpack.c.bf16 %v673_v40, %v673_v40  ;;  %v629_v45 = vadd.f32 %v628_v43, %v446_v19  ;;  %v630_v46 = vpop.f32.mrb[6].mxu0 }
 0x22d   : > { %v631_v48 = vadd.f32 %v630_v46, %v442_v18  ;;  %v632_v49 = vpop.f32.mrb[7].mxu0  ;;  %731 = vst [vmem:[%s1190_s17 + $0x2c] sm:$0xf] %v909_v50 }
 0x22e   : > { %727 = vst [vmem:[%s1190_s17 + $0x14] sm:$0xf] %v905_v44  ;;  %v906_v51 = vpack.c.bf16 %v629_v45, %v627_v42  ;;  %v633_v52 = vadd.f32 %v632_v49, %v446_v19 }
 0x230   : > { %728 = vst [vmem:[%s1190_s17 + $0x18] sm:$0xff] %v906_v51  ;;  %v908_v53 = vpack.c.bf16 %v633_v52, %v631_v48 }
 0x232   : > { %730 = vst [vmem:[%s1190_s17 + $0x24] sm:$0xff] %v908_v53 }
 0x233 PF: > { %s15_s20 = sadd.s32 1, %s1028_s20   ;;  %s1215_s18 = smov %s1024_s19 }
 0x234   : > { %p12_p5 = scmp.ge.s32.totalorder %s15_s20, 4   ;;  %s1216_s19 = smov %s1218_s21 }
 0x236   :  { %14 = sbr.rel (!%p12_p5) target bundleno = 2 (0x2), region = 76 }

// kernel: conch_vision_embedding_forward.19
= control target key start
LH: loop header
LB: loop body
LE: loop exit
PB: predicated region body
PF: predicated region fallthrough
CT: control target
= control target key end

     0   :  { %vm23_vm0 = vcmask 1041408   ;;  %s679_s0 = inlined_call_operand.vmem [shape: f32[2,128], index: 0, kind: input, shape index: {}]   ;;  %s680_s1 = inlined_call_operand.vmem [shape: f32[1,128], index: 1, kind: input, shape index: {}]   ;;  %s681_s2 = inlined_call_operand.vmem [shape: f32[1,128], index: 2, kind: input, shape index: {}]   ;;  %s682_s3 = inlined_call_operand.vmem [shape: bf16[128,512], index: 3, kind: input, shape index: {}]   ;;  %s683_s4 = inlined_call_operand.vmem [shape: f32[1,512], index: 4, kind: input, shape index: {}]   ;;  %s684_s5 = inlined_call_operand.hbm [shape: f32[2,512], index: 5, kind: output, shape index: {}]  }
   0x1   :  { %v22_v0 = vld [vmem:[%s679_s0] sm:$0x3] }
   0x2   :  { %v24_v1 = vsel %vm23_vm0, %v22_v0, 0.0 }
   0x3   :  { %25 = vadd.xlane.f32.xlu0 %v24_v1 }
   0x4   :  { %10 = vsyncpa [#allocation3], 0  ;;  %v444_v2 = vld [vmem:[%s682_s3 + $0x4] ss:$16 sps:$4 sm:$0xff]   ;;  %v446_v3 = vld [vmem:[%s682_s3 + $0xc] ss:$16 sps:$4 sm:$0xff]   ;;  %v89_v50 = vlaneseq }
   0x5   :  { %v448_v4 = vld [vmem:[%s682_s3] ss:$16 sps:$4 sm:$0xff]   ;;  %v449_v5 = vld [vmem:[%s682_s3 + $0x8] ss:$16 sps:$4 sm:$0xff]   ;;  %v450_v6 = vld [vmem:[%s682_s3 + $0x24] ss:$16 sps:$4 sm:$0xff]   ;;  %269 = vmatprep.subr.bf16.mxu0 %v444_v2  ;;  %310 = vmatprep.subr.bf16.mxu1 %v446_v3 }
   0x6   :  { %v452_v7 = vld [vmem:[%s682_s3 + $0x2c] ss:$16 sps:$4 sm:$0xff]   ;;  %270 = vmatpush1.bf16.msra.mxu0 %v448_v4  ;;  %311 = vmatpush1.bf16.msra.mxu1 %v449_v5  ;;  %v454_v8 = vld [vmem:[%s682_s3 + $0x20] ss:$16 sps:$4 sm:$0xff]   ;;  %v455_v9 = vld [vmem:[%s682_s3 + $0x28] ss:$16 sps:$4 sm:$0xff]  }
   0x7   :  { %271 = vmatprep.subr.bf16.mxu0 %v450_v6  ;;  %312 = vmatprep.subr.bf16.mxu1 %v452_v7  ;;  %v456_v10 = vld [vmem:[%s682_s3 + $0x44] ss:$16 sps:$4 sm:$0xff]   ;;  %v458_v11 = vld [vmem:[%s682_s3 + $0x4c] ss:$16 sps:$4 sm:$0xff]   ;;  %v460_v17 = vld [vmem:[%s682_s3 + $0x40] ss:$16 sps:$4 sm:$0xff]  }
   0x8   :  { %v461_v18 = vld [vmem:[%s682_s3 + $0x48] ss:$16 sps:$4 sm:$0xff]   ;;  %v462_v19 = vld [vmem:[%s682_s3 + $0x64] ss:$16 sps:$4 sm:$0xff]   ;;  %v464_v20 = vld [vmem:[%s682_s3 + $0x6c] ss:$16 sps:$4 sm:$0xff]  }
   0x9   :  { %v466_v21 = vld [vmem:[%s682_s3 + $0x60] ss:$16 sps:$4 sm:$0xff]   ;;  %v467_v22 = vld [vmem:[%s682_s3 + $0x68] ss:$16 sps:$4 sm:$0xff]   ;;  %v468_v23 = vld [vmem:[%s682_s3 + $0x84] ss:$16 sps:$4 sm:$0xff]  }
   0xa   :  { %272 = vmatpush1.bf16.msra.mxu0 %v454_v8  ;;  %313 = vmatpush1.bf16.msra.mxu1 %v455_v9  ;;  %v470_v24 = vld [vmem:[%s682_s3 + $0x8c] ss:$16 sps:$4 sm:$0xff]   ;;  %v472_v25 = vld [vmem:[%s682_s3 + $0x80] ss:$16 sps:$4 sm:$0xff]   ;;  %v473_v26 = vld [vmem:[%s682_s3 + $0x88] ss:$16 sps:$4 sm:$0xff]  }
   0xb   :  { %273 = vmatprep.subr.bf16.mxu0 %v456_v10  ;;  %314 = vmatprep.subr.bf16.mxu1 %v458_v11  ;;  %v474_v27 = vld [vmem:[%s682_s3 + $0xa4] ss:$16 sps:$4 sm:$0xff]   ;;  %v476_v28 = vld [vmem:[%s682_s3 + $0xac] ss:$16 sps:$4 sm:$0xff]   ;;  %v478_v29 = vld [vmem:[%s682_s3 + $0xa0] ss:$16 sps:$4 sm:$0xff]  }
   0xc   :  { %v479_v30 = vld [vmem:[%s682_s3 + $0xa8] ss:$16 sps:$4 sm:$0xff]   ;;  %v480_v31 = vld [vmem:[%s682_s3 + $0xc4] ss:$16 sps:$4 sm:$0xff]   ;;  %v482_v32 = vld [vmem:[%s682_s3 + $0xcc] ss:$16 sps:$4 sm:$0xff]  }
   0xd   :  { %v520_v33 = vmov 0   ;;  %v484_v34 = vld [vmem:[%s682_s3 + $0xc0] ss:$16 sps:$4 sm:$0xff]   ;;  %v485_v35 = vld [vmem:[%s682_s3 + $0xc8] ss:$16 sps:$4 sm:$0xff]   ;;  %v90_v51 = vshrl.u32 %v89_v50, 7 }
   0xe   :  { %274 = vmatpush1.bf16.msra.mxu0 %v460_v17  ;;  %315 = vmatpush1.bf16.msra.mxu1 %v461_v18  ;;  %v486_v36 = vld [vmem:[%s682_s3 + $0xe4] ss:$16 sps:$4 sm:$0xff]   ;;  %v488_v37 = vld [vmem:[%s682_s3 + $0xec] ss:$16 sps:$4 sm:$0xff]   ;;  %v490_v38 = vld [vmem:[%s682_s3 + $0xe0] ss:$16 sps:$4 sm:$0xff]  }
   0xf   :  { %275 = vmatprep.subr.bf16.mxu0 %v462_v19  ;;  %316 = vmatprep.subr.bf16.mxu1 %v464_v20  ;;  %v491_v39 = vld [vmem:[%s682_s3 + $0xe8] ss:$16 sps:$4 sm:$0xff]   ;;  %v407_v44 = vld [vmem:[%s680_s1] ss:$0 sm:$0xff]  ;;  %v91_v52 = vsub.s32 0, %v90_v51  ;;  %v99_v53 = vsub.s32 2, %v90_v51 }
  0x10   :  { %301 = vmatprep.mubr.bf16.mxu0 %v520_v33  ;;  %342 = vmatprep.mubr.bf16.mxu1 %v520_v33  ;;  %v408_v46 = vld [vmem:[%s681_s2] ss:$0 sm:$0xff]  ;;  %v95_v55 = vsub.s32 1, %v90_v51  ;;  %v103_v56 = vsub.s32 3, %v90_v51  ;;  %s522_s1 = smov [#allocation2]  }
  0x11   :  { %v87_v54 = vld [vmem:[%s683_s4] sm:$0xf]  ;;  %s399_s2 = sshll.u32 %s522_s1, 4  ;;  %s400_s2 = int_to_ptr.vmem [resolvable:$true] %s399_s2 }
  0x12   :  { %276 = vmatpush1.bf16.msra.mxu0 %v466_v21  ;;  %317 = vmatpush1.bf16.msra.mxu1 %v467_v22  ;;  %v92_v57 = vrot.slane %v87_v54, %v91_v52  ;;  %v100_v58 = vrot.slane %v87_v54, %v99_v53  ;;  %v96_v59 = vrot.slane %v87_v54, %v95_v55  ;;  %v521_v22 = vmov 1983009808   ;;  %s496_s4 = scalar_lea.vmem %s400_s2, 128  ;;  %p501_p1 = scmp.lt.s32.totalorder %s400_s2, %s400_s2 }
  0x13   :  { %277 = vmatprep.subr.bf16.mxu0 %v468_v23  ;;  %318 = vmatprep.subr.bf16.mxu1 %v470_v24  ;;  %v104_v60 = vrot.slane %v87_v54, %v103_v56  ;;  %v377_v23 = vunpack.c.l.s4 %v521_v22  ;;  %p497_p0 = scmp.ne.s32.totalorder %s400_s2, %s496_s4  ;;  %p502_p2 = scmp.lt.s32.totalorder %s496_s4, %s496_s4 }
  0x15   :  { %v378_v24 = vunpack.c.0.s8 %v377_v23  ;;  %p503_p3 = por %p502_p2, %p501_p1 }
  0x16   :  { %278 = vmatpush1.bf16.msra.mxu0 %v472_v25  ;;  %319 = vmatpush1.bf16.msra.mxu1 %v473_v26 }
  0x17   :  { %279 = vmatprep.subr.bf16.mxu0 %v474_v27  ;;  %320 = vmatprep.subr.bf16.mxu1 %v476_v28  ;;  %v381_v26 = vsub.s32 %v378_v24, %v90_v51  ;;  %p504_p4 = pnand %p503_p3, %p497_p0 }
  0x1a   :  { %280 = vmatpush1.bf16.msra.mxu0 %v478_v29  ;;  %321 = vmatpush1.bf16.msra.mxu1 %v479_v30 }
  0x1b   :  { %281 = vmatprep.subr.bf16.mxu0 %v480_v31  ;;  %322 = vmatprep.subr.bf16.mxu1 %v482_v32 }
  0x1e   :  { %282 = vmatpush1.bf16.msra.mxu0 %v484_v34  ;;  %323 = vmatpush1.bf16.msra.mxu1 %v485_v35 }
  0x1f   :  { %283 = vmatprep.subr.bf16.mxu0 %v486_v36  ;;  %324 = vmatprep.subr.bf16.mxu1 %v488_v37 }
  0x22   :  { %284 = vmatpush1.bf16.msra.mxu0 %v490_v38  ;;  %325 = vmatpush1.bf16.msra.mxu1 %v491_v39 }
  0x90   :  { %v26_v12 = vpop.xlane.xlu0 %25 }
  0x91   :  { %v28_v13 = vmul.f32 0.0078125, %v26_v12 }
  0x93   :  { %v29_v14 = vsub.f32 %v22_v0, %v28_v13 }
  0x95   :  { %v30_v15 = vmul.f32 %v29_v14, %v29_v14 }
  0x97   :  { %v31_v16 = vsel %vm23_vm0, %v30_v15, 0.0 }
  0x98   :  { %32 = vadd.xlane.f32.xlu0 %v31_v16 }
 0x125   :  { %v33_v40 = vpop.xlane.xlu0 %32 }
 0x126   :  { %v34_v41 = vmul.f32 0.0078125, %v33_v40 }
 0x128   :  { %v35_v42 = vadd.f32 1e-05, %v34_v41 }
 0x12a   :  { %492 = vrsqrt.f32 %v35_v42 }
 0x134   :  { %v493_v43 = vpop.eup %492 }
 0x135   :  { %v37_v45 = vmul.f32 %v493_v43, %v29_v14 }
 0x137   :  { %v45_v47 = vmul.f32 %v407_v44, %v37_v45 }
 0x139   :  { %v53_v48 = vadd.f32 %v408_v46, %v45_v47 }
 0x13b   :  { %v54_v49 = vpack.c.bf16 %v53_v48, %v53_v48 }
 0x13d   :  { %302 = vmatmul.mubr.bf16.vlgmr.msra.gmra.mrb[0].mxu0 %v54_v49  ;;  %343 = vmatmul.mubr.bf16.vlgmr.msra.gmra.mrb[0].mxu1 %v54_v49 }
 0x210   :  { %v303_v61 = vpop.f32.mrb[0].mxu0  ;;  %v344_v62 = vpop.f32.mrb[0].mxu1 }
 0x211   :  { %v304_v63 = vadd.f32 %v303_v61, %v92_v57  ;;  %v345_v0 = vadd.f32 %v344_v62, %v100_v58  ;;  %v305_v1 = vpop.f32.mrb[1].mxu0  ;;  %v346_v2 = vpop.f32.mrb[1].mxu1 }
 0x212   :  { %v306_v3 = vadd.f32 %v305_v1, %v96_v59  ;;  %v347_v4 = vadd.f32 %v346_v2, %v104_v60  ;;  %v307_v5 = vpop.f32.mrb[2].mxu0  ;;  %v348_v6 = vpop.f32.mrb[2].mxu1 }
 0x213   :  { %v351_v7 = vmul.f32 %v304_v63, %v304_v63  ;;  %v308_v8 = vpop.f32.mrb[3].mxu0  ;;  %v349_v9 = vpop.f32.mrb[3].mxu1  ;;  %v353_v10 = vmul.f32 %v345_v0, %v345_v0 }
 0x214   :  { %v352_v11 = vmul.f32 %v306_v3, %v306_v3  ;;  %v354_v14 = vmul.f32 %v347_v4, %v347_v4 }
 0x215   :  { %v355_v12 = vsel %vm23_vm0, %v351_v7, 0.0  ;;  %v358_v16 = vsel %vm23_vm0, %v353_v10, 0.0 }
 0x216   :  { %v356_v13 = vsel %vm23_vm0, %v352_v11, 0.0  ;;  %v360_v18 = vsel %vm23_vm0, %v354_v14, 0.0 }
 0x217   :  { %v357_v15 = vadd.f32 %v356_v13, %v355_v12 }
 0x219   :  { %v359_v17 = vadd.f32 %v358_v16, %v357_v15 }
 0x21b   :  { %v361_v19 = vadd.f32 %v360_v18, %v359_v17 }
 0x21d   :  { %362 = vadd.xlane.f32.xlu1 %v361_v19 }
 0x2aa   :  { %v363_v20 = vpop.xlane.xlu1 %362 }
 0x2ab   :  { %v364_v21 = vmax.f32 %v363_v20, 1e-24 }
 0x2ad   :  { %494 = vrsqrt.f32 %v364_v21 }
 0x2b7   :  { %v495_v25 = vpop.eup %494 }
 0x2b8   :  { %v366_v27 = vmul.f32 %v495_v25, %v304_v63  ;;  %v367_v28 = vmul.f32 %v495_v25, %v306_v3  ;;  %v368_v29 = vmul.f32 %v495_v25, %v345_v0  ;;  %v369_v30 = vmul.f32 %v495_v25, %v347_v4 }
 0x2ba   :  { %v374_v31 = vcombine.low %v366_v27, %v367_v28  ;;  %v375_v32 = vcombine.low %v368_v29, %v369_v30 }
 0x2bc   :  { %v382_v33 = vrot.slane %v374_v31, %v381_v26  ;;  %v389_v34 = vrot.slane %v375_v32, %v381_v26 }
 0x2be   :  { %v390_v35 = vcombine.low %v382_v33, %v389_v34 }
 0x2c0   :  { %392 = vst [vmem:[#allocation2] sm:$0xff] %v390_v35 }
 0x2c1   :  { %507 = shalt.err (!%p504_p4)
}
 0x2c2   :  { %s508_s13 = scalar_lea.hbm %s684_s5, 128 }
 0x2c3   :  { %p509_p5 = scmp.ne.s32.totalorder %s684_s5, %s508_s13  ;;  %p512_p6 = scmp.lt.u32.totalorder %s508_s13, %s684_s5 }
 0x2c5   :  { %p514_p7 = pnand %p512_p6, %p509_p5 }
 0x2c7   :  { %517 = shalt.err (!%p514_p7)
}
 0x2c8   :  { %402 = dma.vmem_to_hbm [thread:$0]  %s400_s2, 128, %s684_s5, [#allocation3]  }
 0x2c9   :  { %518 = dma.done.wait [#allocation3], 128  }
 0x2ca   :  { %519 = vsyncadd [#allocation3], 4294967168 }
 0x2cb   :  { %406 = vsyncpa [#allocation3], 1 }

// kernel: conch_vision_embedding_forward.12
= control target key start
LH: loop header
LB: loop body
LE: loop exit
PB: predicated region body
PF: predicated region fallthrough
CT: control target
= control target key end

     0   :  { %s1487_s6 = smov 0   ;;  %s1721_s0 = inlined_call_operand.vmem [shape: bf16[2,32,384], index: 0, kind: input, shape index: {}]   ;;  %s1722_s1 = inlined_call_operand.vmem [shape: bf16[2,32,128], index: 1, kind: output, shape index: {}]  }
   0x1 LB: > { %s1179_s7 = sadd.s32 4294967295, %s1472_s6   ;;  %p1183_p0 = scmp.ge.s32.totalorder %s1472_s6, 1  ;;  %s1472_s6 = sphi %s1487_s6, %s11_s6  }
   0x2   : > { %p87_p1 = scmp.lt.s32.totalorder %s1472_s6, 3 }
   0x4   : > { %p88_p2 = pnand %p1183_p0, %p87_p1 }
   0x5   : > { %p107_p3 = scmp.lt.s32.totalorder (!%p88_p2), %s1179_s7, 1  ;;  %vm153_vm0 = vcmask (!%p88_p2), 261120   ;;  %v118_v6 = vlaneseq (!%p88_p2)  ;;  %s1474_s12 = smov (!%p88_p2), 96   ;;  %vm354_vm2 = vcmask (!%p88_p2), 257024   ;;  %vm609_vm3 = vcmask (!%p88_p2), 519424  }
   0x6   : > { %91 = sbr.rel (%p88_p2) target bundleno = 2594 (0xa22), region = 24  ;;  %s1475_s17 = smov (!%p88_p2), 64   ;;  %vm864_vm4 = vcmask (!%p88_p2), 781824   ;;  %vm1119_vm5 = vcmask (!%p88_p2), 1044224  }
   0x7   : > { %v1513_v7 = vand.u32 (!%p88_p2), 127, %v118_v6  ;;  %s1476_s18 = smov (!%p88_p2), 32  }
   0x9   : > { %vm120_vm1 = vcmp.lt.s32.totalorder (!%p88_p2), %v1513_v7, 17 }
   0xd   : > { %s1724_s7 = smov (!%p107_p3, %s1179_s7), 1 }
   0xe   : > { %s1366_s8 = smul.u32 48, %s1724_s7  ;;  %s1245_s13 = sshll.u32 %s1724_s7, 4 }
   0xf   : > { %s1554_s16 = scalar_lea.vmem %s1722_s1, %s1245_s13 }
  0x10   : > { %s1501_s11 = scalar_lea.vmem %s1721_s0, %s1366_s8 }
  0x11   : > { %v1378_v0 = vld [vmem:[%s1501_s11 + $0x4] ss:$12 sps:$4 sm:$0xff]   ;;  %v1379_v1 = vld [vmem:[%s1501_s11 + $0x1c] ss:$12 sps:$4 sm:$0xff]   ;;  %v1380_v3 = vld [vmem:[%s1501_s11] ss:$12 sps:$4 sm:$0xff]  }
  0x12   : > { %1358 = vmatprep.subr.msk.bf16.mxu0 %vm153_vm0, %v1378_v0  ;;  %v161_v2 = vsel %vm153_vm0, %v1378_v0, 0  ;;  %v164_v4 = vsel %vm153_vm0, %v1379_v1, 0  ;;  %1298 = vmatprep.mubr.msk.bf16.mxu0 %vm153_vm0, %v1380_v3  ;;  %v1381_v5 = vld [vmem:[%s1501_s11 + $0x18] ss:$12 sps:$4 sm:$0xff]   ;;  %v1383_v45 = vld [vmem:[%s1501_s11 + $0x1c] ss:$12 sps:$4 sm:$0xff]  }
  0x13   : > { %1295 = vmatpush3.bf16.xpose.msra.mxu0 %v161_v2  ;;  %v1382_v44 = vld [vmem:[%s1501_s11 + $0x4] ss:$12 sps:$4 sm:$0xff]   ;;  %v1386_v46 = vld [vmem:[%s1501_s11 + $0x8] ss:$12 sps:$4 sm:$0xff]   ;;  %v1387_v47 = vld [vmem:[%s1501_s11 + $0x20] ss:$12 sps:$4 sm:$0xff]  }
  0x14   : > { %1359 = vmatprep.subr.msk.bf16.mxu0 %vm153_vm0, %v1379_v1  ;;  %1302 = vmatprep.subr.bf16.mxu1 %v1386_v46  ;;  %v1384_v48 = vld [vmem:[%s1501_s11] ss:$12 sps:$4 sm:$0xff]   ;;  %v1385_v49 = vld [vmem:[%s1501_s11 + $0x18] ss:$12 sps:$4 sm:$0xff]  }
  0x15   : > { %1303 = vmatpush3.bf16.msra.mxu1 %v1386_v46 }
  0x16   : > { %1304 = vmatprep.subr.bf16.mxu1 %v1387_v47 }
  0x19   : > { %1305 = vmatpush3.bf16.msra.mxu1 %v1387_v47 }
  0x1b   : > { %1297 = vmatpush3.bf16.xpose.msra.mxu0 %v164_v4 }
  0x22   : > { %1299 = vmatmul.mubr.msk.bf16.vlgmr.msra.gmra.mrb[0].mxu0 %vm153_vm0, %v1381_v5 }
  0xf5   : > { %v1300_v8 = vpop.f32.mrb[0].mxu0 }
  0xf6   : > { %v217_v9 = vmul.f32 0.17677669, %v1300_v8  ;;  %v200_v10 = vpop.f32.mrb[1].mxu0 }
  0xf7   : > { %v215_v11 = vmul.f32 0.17677669, %v200_v10  ;;  %v1301_v12 = vpop.f32.mrb[2].mxu0 }
  0xf8   : > { %v218_v13 = vmul.f32 0.17677669, %v1301_v12  ;;  %v203_v14 = vpop.f32.mrb[3].mxu0  ;;  %v223_v15 = vsel %vm120_vm1, %v217_v9, -1e+30 }
  0xf9   : > { %v216_v16 = vmul.f32 0.17677669, %v203_v14  ;;  %v231_v17 = vsel %vm153_vm0, %v223_v15, -inf  ;;  %v221_v18 = vsel %vm120_vm1, %v215_v11, -1e+30 }
  0xfa   : > { %232 = vmax.xlane.f32.xlu1 %v231_v17  ;;  %v225_v19 = vsel %vm153_vm0, %v221_v18, -inf  ;;  %v224_v20 = vsel %vm120_vm1, %v218_v13, -1e+30 }
  0xfb   : > { %226 = vmax.xlane.f32.xlu0 %v225_v19  ;;  %v222_v21 = vsel %vm120_vm1, %v216_v16, -1e+30  ;;  %v234_v22 = vsel %vm153_vm0, %v224_v20, -inf }
  0xfc   : > { %v228_v23 = vsel %vm153_vm0, %v222_v21, -inf }
  0xfe   : > { %235 = vmax.xlane.f32.xlu1 %v234_v22 }
  0xff   : > { %229 = vmax.xlane.f32.xlu0 %v228_v23 }
 0x187   : > { %v233_v24 = vpop.xlane.xlu1 %232 }
 0x188   : > { %v239_v25 = vsub.f32 %v223_v15, %v233_v24  ;;  %v227_v26 = vpop.xlane.xlu0 %226 }
 0x189   : > { %v237_v27 = vsub.f32 %v221_v18, %v227_v26 }
 0x18a   : > { %v245_v28 = vmul.f32 1.442695, %v239_v25 }
 0x18b   : > { %v241_v29 = vmul.f32 1.442695, %v237_v27  ;;  %v236_v30 = vpop.xlane.xlu1 %235 }
 0x18c   : > { %1402 = vpow2.f32 %v245_v28  ;;  %v240_v31 = vsub.f32 %v224_v20, %v236_v30  ;;  %v230_v32 = vpop.xlane.xlu0 %229 }
 0x18d   : > { %v238_v33 = vsub.f32 %v222_v21, %v230_v32  ;;  %1404 = vpow2.f32 %v241_v29 }
 0x18e   : > { %v247_v34 = vmul.f32 1.442695, %v240_v31  ;;  %v1388_v31 = vld [vmem:[%s1501_s11 + $0x20] ss:$12 sps:$4 sm:$0xff]  }
 0x18f   : > { %v243_v35 = vmul.f32 1.442695, %v238_v33 }
 0x191   : > { %1406 = vpow2.f32 %v243_v35 }
 0x192   : > { %1408 = vpow2.f32 %v247_v34 }
 0x196   : > { %v1403_v36 = vpop.eup %1402 }
 0x197   : > { %v255_v37 = vsel %vm153_vm0, %v1403_v36, 0.0  ;;  %v1405_v38 = vpop.eup %1404 }
 0x198   : > { %256 = vadd.xlane.f32.xlu0 %v255_v37  ;;  %v249_v40 = vsel %vm153_vm0, %v1405_v38, 0.0 }
 0x19b   : > { %v1407_v39 = vpop.eup %1406 }
 0x19c   : > { %250 = vadd.xlane.f32.xlu0 %v249_v40  ;;  %v252_v41 = vsel %vm153_vm0, %v1407_v39, 0.0  ;;  %v1409_v42 = vpop.eup %1408 }
 0x19d   : > { %253 = vadd.xlane.f32.xlu1 %v252_v41  ;;  %v258_v43 = vsel %vm153_vm0, %v1409_v42, 0.0 }
 0x1a1   : > { %259 = vadd.xlane.f32.xlu1 %v258_v43 }
 0x1b2   : > { %395 = vrot.lane.b32.xlu0 %v1382_v44, %s1474_s12  ;;  %397 = vrot.lane.b32.xlu1 %v1383_v45, %s1474_s12 }
 0x1b6   : > { %381 = vrot.lane.b32.xlu1 %v1384_v48, %s1474_s12 }
 0x1ba   : > { %383 = vrot.lane.b32.xlu1 %v1385_v49, %s1474_s12 }
 0x225   : > { %v257_v50 = vpop.xlane.xlu0 %256 }
 0x229   : > { %v251_v51 = vpop.xlane.xlu0 %250 }
 0x22a   : > { %1410 = vrcp.f32 %v251_v51  ;;  %v254_v52 = vpop.xlane.xlu1 %253 }
 0x22b   : > { %1412 = vrcp.f32 %v254_v52  ;;  %v1390_v52 = vld [vmem:[%s1501_s11 + $0x4] ss:$12 sps:$4 sm:$0xff]  }
 0x22c   : > { %1414 = vrcp.f32 %v257_v50 }
 0x22d   : > { %v396_v53 = vpop.permute.xlu0 %395 }
 0x22e   : > { %v260_v54 = vpop.xlane.xlu1 %259  ;;  %1360 = vmatprep.subr.msk.bf16.mxu1 %vm153_vm0, %v396_v53  ;;  %v406_v1 = vsel %vm153_vm0, %v396_v53, 0  ;;  %v1389_v53 = vld [vmem:[%s1501_s11 + $0x8] ss:$12 sps:$4 sm:$0xff]  }
 0x22f   : > { %1416 = vrcp.f32 %v260_v54  ;;  %v1391_v54 = vld [vmem:[%s1501_s11 + $0x1c] ss:$12 sps:$4 sm:$0xff]  }
 0x232   : > { %v398_v59 = vpop.permute.xlu1 %397 }
 0x233   : > { %v409_v4 = vsel %vm153_vm0, %v398_v59, 0 }
 0x234   : > { %v1411_v55 = vpop.eup %1410 }
 0x235   : > { %v1413_v56 = vpop.eup %1412  ;;  %v265_v57 = vmul.f32 %v1411_v55, %v1405_v38  ;;  %v1392_v55 = vld [vmem:[%s1501_s11] ss:$12 sps:$4 sm:$0xff]  }
 0x236   : > { %v266_v58 = vmul.f32 %v1413_v56, %v1407_v39  ;;  %v1415_v60 = vpop.eup %1414  ;;  %v382_v3 = vpop.permute.xlu1 %381  ;;  %v1393_v56 = vld [vmem:[%s1501_s11 + $0x18] ss:$12 sps:$4 sm:$0xff]  }
 0x237   : > { %v267_v63 = vmul.f32 %v1415_v60, %v1403_v36 }
 0x238   : > { %v269_v61 = vpack.c.bf16 %v266_v58, %v265_v57 }
 0x239   : > { %v1417_v62 = vpop.eup %1416 }
 0x23a   : > { %1306 = vmatprep.mubr.msk.bf16.mxu1 %vm153_vm0, %v269_v61  ;;  %v268_v0 = vmul.f32 %v1417_v62, %v1409_v42  ;;  %v384_v5 = vpop.permute.xlu1 %383 }
 0x23c   : > { %v270_v2 = vpack.c.bf16 %v268_v0, %v267_v63 }
 0x23e   : > { %1307 = vmatmul.mubr.msk.bf16.vlgmr.msra.gmra.mrb[0].mxu1 %vm153_vm0, %v270_v2 }
 0x23f   : > { %1311 = vmatpush3.bf16.xpose.msra.mxu1 %v406_v1  ;;  %1314 = vmatprep.mubr.msk.bf16.mxu1 %vm153_vm0, %v382_v3 }
 0x240   : > { %1361 = vmatprep.subr.msk.bf16.mxu1 %vm153_vm0, %v398_v59 }
 0x247   : > { %1313 = vmatpush3.bf16.xpose.msra.mxu1 %v409_v4 }
 0x24e   : > { %1315 = vmatmul.mubr.msk.bf16.vlgmr.msra.gmra.mrb[4].mxu1 %vm153_vm0, %v384_v5 }
 0x311   : > { %v1308_v6 = vpop.f32.mrb[0].mxu1 }
 0x312   : > { %v1248_v8 = vpack.c.bf16 %v1308_v6, %v1308_v6  ;;  %v323_v9 = vpop.f32.mrb[1].mxu1 }
 0x313   : > { %v1246_v10 = vpack.c.bf16 %v323_v9, %v323_v9  ;;  %v1309_v11 = vpop.f32.mrb[2].mxu1 }
 0x314   : > { %357 = vst.msk [vmem:[%s1554_s16 + $0x8] sm:$0xf] %vm354_vm2, %v1248_v8  ;;  %v1249_v12 = vpack.c.bf16 %v1309_v11, %v1309_v11  ;;  %v326_v13 = vpop.f32.mrb[3].mxu1 }
 0x315   : > { %355 = vst.msk [vmem:[%s1554_s16] sm:$0xf] %vm354_vm2, %v1246_v10  ;;  %v1247_v14 = vpack.c.bf16 %v326_v13, %v326_v13 }
 0x316   : > { %358 = vst.msk [vmem:[%s1554_s16 + $0xc] sm:$0xf] %vm354_vm2, %v1249_v12 }
 0x317   : > { %356 = vst.msk [vmem:[%s1554_s16 + $0x4] sm:$0xf] %vm354_vm2, %v1247_v14 }
 0x321   : > { %v1316_v15 = vpop.f32.mrb[4].mxu1 }
 0x322   : > { %v445_v16 = vpop.f32.mrb[5].mxu1  ;;  %v462_v17 = vmul.f32 0.17677669, %v1316_v15 }
 0x323   : > { %v460_v18 = vmul.f32 0.17677669, %v445_v16  ;;  %v1317_v19 = vpop.f32.mrb[6].mxu1 }
 0x324   : > { %v448_v20 = vpop.f32.mrb[7].mxu1  ;;  %v463_v24 = vmul.f32 0.17677669, %v1317_v19  ;;  %v466_v26 = vsel %vm120_vm1, %v462_v17, -1e+30 }
 0x325   : > { %v461_v21 = vmul.f32 0.17677669, %v448_v20  ;;  %v464_v22 = vsel %vm120_vm1, %v460_v18, -1e+30  ;;  %v474_v28 = vsel %vm153_vm0, %v466_v26, -inf }
 0x326   : > { %v468_v23 = vsel %vm153_vm0, %v464_v22, -inf  ;;  %v467_v29 = vsel %vm120_vm1, %v463_v24, -1e+30 }
 0x327   : > { %469 = vmax.xlane.f32.xlu0 %v468_v23  ;;  %v465_v25 = vsel %vm120_vm1, %v461_v21, -1e+30  ;;  %v477_v30 = vsel %vm153_vm0, %v467_v29, -inf }
 0x328   : > { %v471_v27 = vsel %vm153_vm0, %v465_v25, -inf }
 0x329   : > { %472 = vmax.xlane.f32.xlu1 %v471_v27 }
 0x32b   : > { %475 = vmax.xlane.f32.xlu0 %v474_v28 }
 0x32f   : > { %478 = vmax.xlane.f32.xlu0 %v477_v30 }
 0x33a   : > { %526 = vrot.lane.b32.xlu1 %v1388_v31, %s1474_s12 }
 0x3b4   : > { %v470_v32 = vpop.xlane.xlu0 %469 }
 0x3b5   : > { %v480_v33 = vsub.f32 %v464_v22, %v470_v32 }
 0x3b6   : > { %v473_v34 = vpop.xlane.xlu1 %472 }
 0x3b7   : > { %v484_v37 = vmul.f32 1.442695, %v480_v33  ;;  %v481_v38 = vsub.f32 %v465_v25, %v473_v34 }
 0x3b8   : > { %v476_v35 = vpop.xlane.xlu0 %475 }
 0x3b9   : > { %v482_v36 = vsub.f32 %v466_v26, %v476_v35  ;;  %v486_v42 = vmul.f32 1.442695, %v481_v38 }
 0x3ba   : > { %v527_v57 = vpop.permute.xlu1 %526 }
 0x3bb   : > { %v488_v39 = vmul.f32 1.442695, %v482_v36  ;;  %v1394_v36 = vld [vmem:[%s1501_s11 + $0x20] ss:$12 sps:$4 sm:$0xff]  }
 0x3bc   : > { %v479_v40 = vpop.xlane.xlu0 %478 }
 0x3bd   : > { %1418 = vpow2.f32 %v488_v39  ;;  %v483_v41 = vsub.f32 %v467_v29, %v479_v40 }
 0x3be   : > { %1420 = vpow2.f32 %v484_v37 }
 0x3bf   : > { %v490_v43 = vmul.f32 1.442695, %v483_v41 }
 0x3c1   : > { %1422 = vpow2.f32 %v490_v43 }
 0x3c2   : > { %1424 = vpow2.f32 %v486_v42 }
 0x3c7   : > { %v1419_v44 = vpop.eup %1418 }
 0x3c8   : > { %v498_v45 = vsel %vm153_vm0, %v1419_v44, 0.0  ;;  %v1421_v46 = vpop.eup %1420 }
 0x3c9   : > { %499 = vadd.xlane.f32.xlu0 %v498_v45  ;;  %v492_v48 = vsel %vm153_vm0, %v1421_v46, 0.0 }
 0x3cb   : > { %v1423_v47 = vpop.eup %1422 }
 0x3cc   : > { %v501_v49 = vsel %vm153_vm0, %v1423_v47, 0.0  ;;  %v1425_v50 = vpop.eup %1424 }
 0x3cd   : > { %493 = vadd.xlane.f32.xlu0 %v492_v48  ;;  %502 = vadd.xlane.f32.xlu1 %v501_v49  ;;  %v495_v51 = vsel %vm153_vm0, %v1425_v50, 0.0 }
 0x3d1   : > { %496 = vadd.xlane.f32.xlu1 %v495_v51 }
 0x3e2   : > { %650 = vrot.lane.b32.xlu1 %v1390_v52, %s1475_s17 }
 0x3e3   : > { %524 = vrot.lane.b32.xlu0 %v1389_v53, %s1474_s12 }
 0x3e6   : > { %652 = vrot.lane.b32.xlu1 %v1391_v54, %s1475_s17 }
 0x3e7   : > { %636 = vrot.lane.b32.xlu0 %v1392_v55, %s1475_s17 }
 0x3ea   : > { %638 = vrot.lane.b32.xlu1 %v1393_v56, %s1475_s17 }
 0x456   : > { %v500_v58 = vpop.xlane.xlu0 %499 }
 0x45a   : > { %v494_v59 = vpop.xlane.xlu0 %493  ;;  %v503_v60 = vpop.xlane.xlu1 %502 }
 0x45b   : > { %1426 = vrcp.f32 %v503_v60  ;;  %v1398_v60 = vld [vmem:[%s1501_s11] ss:$12 sps:$4 sm:$0xff]  }
 0x45c   : > { %1428 = vrcp.f32 %v494_v59  ;;  %v1397_v59 = vld [vmem:[%s1501_s11 + $0x1c] ss:$12 sps:$4 sm:$0xff]  }
 0x45d   : > { %1430 = vrcp.f32 %v500_v58  ;;  %v1395_v58 = vld [vmem:[%s1501_s11 + $0x8] ss:$12 sps:$4 sm:$0xff]  }
 0x45e   : > { %v525_v61 = vpop.permute.xlu0 %524  ;;  %v497_v62 = vpop.xlane.xlu1 %496 }
 0x45f   : > { %1432 = vrcp.f32 %v497_v62  ;;  %1318 = vmatprep.subr.bf16.mxu0 %v525_v61 }
 0x460   : > { %1319 = vmatpush3.bf16.msra.mxu0 %v525_v61  ;;  %v1399_v61 = vld [vmem:[%s1501_s11 + $0x18] ss:$12 sps:$4 sm:$0xff]  }
 0x461   : > { %1320 = vmatprep.subr.bf16.mxu0 %v527_v57 }
 0x462   : > { %v651_v63 = vpop.permute.xlu1 %650  ;;  %v637_v12 = vpop.permute.xlu0 %636 }
 0x463   : > { %v661_v10 = vsel %vm153_vm0, %v651_v63, 0 }
 0x464   : > { %1321 = vmatpush3.bf16.msra.mxu0 %v527_v57  ;;  %v1396_v57 = vld [vmem:[%s1501_s11 + $0x4] ss:$12 sps:$4 sm:$0xff]  }
 0x465   : > { %1362 = vmatprep.subr.msk.bf16.mxu0 %vm153_vm0, %v651_v63  ;;  %v1427_v0 = vpop.eup %1426 }
 0x466   : > { %v1429_v1 = vpop.eup %1428  ;;  %v511_v4 = vmul.f32 %v1427_v0, %v1423_v47  ;;  %v653_v13 = vpop.permute.xlu1 %652 }
 0x467   : > { %v1431_v2 = vpop.eup %1430  ;;  %v508_v5 = vmul.f32 %v1429_v1, %v1421_v46  ;;  %v664_v14 = vsel %vm153_vm0, %v653_v13, 0 }
 0x468   : > { %v510_v8 = vmul.f32 %v1431_v2, %v1419_v44 }
 0x469   : > { %v1433_v3 = vpop.eup %1432 }
 0x46a   : > { %v509_v6 = vmul.f32 %v1433_v3, %v1425_v50  ;;  %v513_v11 = vpack.c.bf16 %v511_v4, %v510_v8  ;;  %v639_v15 = vpop.permute.xlu1 %638 }
 0x46c   : > { %v512_v9 = vpack.c.bf16 %v509_v6, %v508_v5 }
 0x46e   : > { %1322 = vmatprep.mubr.msk.bf16.mxu0 %vm153_vm0, %v512_v9 }
 0x46f   : > { %1323 = vmatmul.mubr.msk.bf16.vlgmr.msra.gmra.mrb[4].mxu0 %vm153_vm0, %v513_v11 }
 0x470   : > { %1327 = vmatpush3.bf16.xpose.msra.mxu0 %v661_v10  ;;  %1330 = vmatprep.mubr.msk.bf16.mxu0 %vm153_vm0, %v637_v12 }
 0x471   : > { %1363 = vmatprep.subr.msk.bf16.mxu0 %vm153_vm0, %v653_v13 }
 0x478   : > { %1329 = vmatpush3.bf16.xpose.msra.mxu0 %v664_v14 }
 0x47f   : > { %1331 = vmatmul.mubr.msk.bf16.vlgmr.msra.gmra.mrb[8].mxu0 %vm153_vm0, %v639_v15 }
 0x542   : > { %v1596_v16 = vpop.f32.mrb[4].mxu0 }
 0x543   : > { %v1598_v17 = vpop.f32.mrb[5].mxu0 }
 0x544   : > { %v1600_v18 = vpop.f32.mrb[6].mxu0 }
 0x545   : > { %v1602_v19 = vpop.f32.mrb[7].mxu0 }
 0x552   : > { %v1332_v20 = vpop.f32.mrb[8].mxu0 }
 0x553   : > { %v700_v21 = vpop.f32.mrb[9].mxu0  ;;  %v717_v22 = vmul.f32 0.17677669, %v1332_v20 }
 0x554   : > { %v715_v23 = vmul.f32 0.17677669, %v700_v21  ;;  %v1333_v24 = vpop.f32.mrb[10].mxu0 }
 0x555   : > { %v703_v25 = vpop.f32.mrb[11].mxu0  ;;  %v718_v29 = vmul.f32 0.17677669, %v1333_v24  ;;  %v721_v31 = vsel %vm120_vm1, %v717_v22, -1e+30 }
 0x556   : > { %v716_v26 = vmul.f32 0.17677669, %v703_v25  ;;  %v719_v27 = vsel %vm120_vm1, %v715_v23, -1e+30  ;;  %v729_v33 = vsel %vm153_vm0, %v721_v31, -inf }
 0x557   : > { %v723_v28 = vsel %vm153_vm0, %v719_v27, -inf  ;;  %v722_v34 = vsel %vm120_vm1, %v718_v29, -1e+30 }
 0x558   : > { %724 = vmax.xlane.f32.xlu0 %v723_v28  ;;  %v720_v30 = vsel %vm120_vm1, %v716_v26, -1e+30  ;;  %v732_v35 = vsel %vm153_vm0, %v722_v34, -inf }
 0x559   : > { %v726_v32 = vsel %vm153_vm0, %v720_v30, -inf }
 0x55a   : > { %727 = vmax.xlane.f32.xlu1 %v726_v32 }
 0x55c   : > { %730 = vmax.xlane.f32.xlu0 %v729_v33 }
 0x560   : > { %733 = vmax.xlane.f32.xlu0 %v732_v35 }
 0x56b   : > { %781 = vrot.lane.b32.xlu1 %v1394_v36, %s1475_s17 }
 0x5e5   : > { %v725_v37 = vpop.xlane.xlu0 %724 }
 0x5e6   : > { %v735_v38 = vsub.f32 %v719_v27, %v725_v37 }
 0x5e7   : > { %v728_v39 = vpop.xlane.xlu1 %727 }
 0x5e8   : > { %v739_v42 = vmul.f32 1.442695, %v735_v38  ;;  %v736_v43 = vsub.f32 %v720_v30, %v728_v39 }
 0x5e9   : > { %v731_v40 = vpop.xlane.xlu0 %730 }
 0x5ea   : > { %v737_v41 = vsub.f32 %v721_v31, %v731_v40  ;;  %v741_v47 = vmul.f32 1.442695, %v736_v43 }
 0x5eb   : > { %v782_v62 = vpop.permute.xlu1 %781 }
 0x5ec   : > { %v743_v44 = vmul.f32 1.442695, %v737_v41 }
 0x5ed   : > { %v734_v45 = vpop.xlane.xlu0 %733 }
 0x5ee   : > { %1434 = vpow2.f32 %v743_v44  ;;  %v738_v46 = vsub.f32 %v722_v34, %v734_v45 }
 0x5ef   : > { %1436 = vpow2.f32 %v739_v42 }
 0x5f0   : > { %v745_v48 = vmul.f32 1.442695, %v738_v46 }
 0x5f2   : > { %1438 = vpow2.f32 %v745_v48 }
 0x5f3   : > { %1440 = vpow2.f32 %v741_v47 }
 0x5f8   : > { %v1435_v49 = vpop.eup %1434 }
 0x5f9   : > { %v753_v50 = vsel %vm153_vm0, %v1435_v49, 0.0  ;;  %v1437_v51 = vpop.eup %1436 }
 0x5fa   : > { %754 = vadd.xlane.f32.xlu0 %v753_v50  ;;  %v747_v53 = vsel %vm153_vm0, %v1437_v51, 0.0 }
 0x5fc   : > { %v1439_v52 = vpop.eup %1438 }
 0x5fd   : > { %v756_v54 = vsel %vm153_vm0, %v1439_v52, 0.0  ;;  %v1441_v55 = vpop.eup %1440 }
 0x5fe   : > { %748 = vadd.xlane.f32.xlu0 %v747_v53  ;;  %757 = vadd.xlane.f32.xlu1 %v756_v54  ;;  %v750_v56 = vsel %vm153_vm0, %v1441_v55, 0.0 }
 0x602   : > { %751 = vadd.xlane.f32.xlu1 %v750_v56 }
 0x613   : > { %905 = vrot.lane.b32.xlu1 %v1396_v57, %s1476_s18 }
 0x614   : > { %779 = vrot.lane.b32.xlu0 %v1395_v58, %s1475_s17 }
 0x617   : > { %907 = vrot.lane.b32.xlu1 %v1397_v59, %s1476_s18 }
 0x618   : > { %891 = vrot.lane.b32.xlu0 %v1398_v60, %s1476_s18 }
 0x61b   : > { %893 = vrot.lane.b32.xlu1 %v1399_v61, %s1476_s18 }
 0x687   : > { %v755_v63 = vpop.xlane.xlu0 %754 }
 0x68b   : > { %v749_v0 = vpop.xlane.xlu0 %748  ;;  %v758_v1 = vpop.xlane.xlu1 %757 }
 0x68c   : > { %1442 = vrcp.f32 %v758_v1  ;;  %v1401_v1 = vld [vmem:[%s1501_s11 + $0x8] ss:$12 sps:$4 sm:$0xff]  }
 0x68d   : > { %1444 = vrcp.f32 %v749_v0  ;;  %v1400_v0 = vld [vmem:[%s1501_s11 + $0x20] ss:$12 sps:$4 sm:$0xff]  }
 0x68e   : > { %1446 = vrcp.f32 %v755_v63 }
 0x68f   : > { %v780_v2 = vpop.permute.xlu0 %779  ;;  %v752_v3 = vpop.xlane.xlu1 %751 }
 0x690   : > { %1448 = vrcp.f32 %v752_v3  ;;  %1334 = vmatprep.subr.bf16.mxu1 %v780_v2  ;;  %v1252_v3 = vpack.c.bf16 %v1596_v16, %v1596_v16 }
 0x691   : > { %1335 = vmatpush3.bf16.msra.mxu1 %v780_v2  ;;  %v1250_v2 = vpack.c.bf16 %v1598_v17, %v1598_v17 }
 0x692   : > { %1336 = vmatprep.subr.bf16.mxu1 %v782_v62 }
 0x693   : > { %v906_v4 = vpop.permute.xlu1 %905  ;;  %v892_v21 = vpop.permute.xlu0 %891 }
 0x694   : > { %v916_v15 = vsel %vm153_vm0, %v906_v4, 0 }
 0x695   : > { %1337 = vmatpush3.bf16.msra.mxu1 %v782_v62 }
 0x696   : > { %1364 = vmatprep.subr.msk.bf16.mxu1 %vm153_vm0, %v906_v4  ;;  %v1443_v5 = vpop.eup %1442  ;;  %v1251_v4 = vpack.c.bf16 %v1602_v19, %v1602_v19 }
 0x697   : > { %v1445_v6 = vpop.eup %1444  ;;  %v766_v10 = vmul.f32 %v1443_v5, %v1439_v52  ;;  %v908_v22 = vpop.permute.xlu1 %907 }
 0x698   : > { %v1447_v8 = vpop.eup %1446  ;;  %v763_v11 = vmul.f32 %v1445_v6, %v1437_v51  ;;  %v919_v23 = vsel %vm153_vm0, %v908_v22, 0  ;;  %v1253_v6 = vpack.c.bf16 %v1600_v18, %v1600_v18 }
 0x699   : > { %v765_v13 = vmul.f32 %v1447_v8, %v1435_v49 }
 0x69a   : > { %v1449_v9 = vpop.eup %1448 }
 0x69b   : > { %v764_v12 = vmul.f32 %v1449_v9, %v1441_v55  ;;  %v768_v20 = vpack.c.bf16 %v766_v10, %v765_v13  ;;  %v894_v24 = vpop.permute.xlu1 %893 }
 0x69d   : > { %v767_v14 = vpack.c.bf16 %v764_v12, %v763_v11 }
 0x69f   : > { %1338 = vmatprep.mubr.msk.bf16.mxu1 %vm153_vm0, %v767_v14 }
 0x6a0   : > { %1339 = vmatmul.mubr.msk.bf16.vlgmr.msra.gmra.mrb[8].mxu1 %vm153_vm0, %v768_v20 }
 0x6a1   : > { %1343 = vmatpush3.bf16.xpose.msra.mxu1 %v916_v15  ;;  %1346 = vmatprep.mubr.msk.bf16.mxu1 %vm153_vm0, %v892_v21 }
 0x6a2   : > { %1365 = vmatprep.subr.msk.bf16.mxu1 %vm153_vm0, %v908_v22 }
 0x6a9   : > { %1345 = vmatpush3.bf16.xpose.msra.mxu1 %v919_v23 }
 0x6b0   : > { %1347 = vmatmul.mubr.msk.bf16.vlgmr.msra.gmra.mrb[12].mxu1 %vm153_vm0, %v894_v24 }
 0x773   : > { %v1640_v25 = vpop.f32.mrb[8].mxu1 }
 0x774   : > { %v825_v26 = vpop.f32.mrb[9].mxu1  ;;  %v1256_v17 = vpack.c.bf16 %v1640_v25, %v1640_v25 }
 0x775   : > { %v1642_v27 = vpop.f32.mrb[10].mxu1  ;;  %v1254_v5 = vpack.c.bf16 %v825_v26, %v825_v26 }
 0x776   : > { %v1644_v28 = vpop.f32.mrb[11].mxu1  ;;  %v1257_v19 = vpack.c.bf16 %v1642_v27, %v1642_v27 }
 0x777   : > { %v1255_v16 = vpack.c.bf16 %v1644_v28, %v1644_v28 }
 0x783   : > { %v1348_v29 = vpop.f32.mrb[12].mxu1 }
 0x784   : > { %v955_v30 = vpop.f32.mrb[13].mxu1  ;;  %v972_v31 = vmul.f32 0.17677669, %v1348_v29 }
 0x785   : > { %v970_v32 = vmul.f32 0.17677669, %v955_v30  ;;  %v1349_v33 = vpop.f32.mrb[14].mxu1 }
 0x786   : > { %v958_v34 = vpop.f32.mrb[15].mxu1  ;;  %v973_v38 = vmul.f32 0.17677669, %v1349_v33  ;;  %v976_v40 = vsel %vm120_vm1, %v972_v31, -1e+30 }
 0x787   : > { %v971_v35 = vmul.f32 0.17677669, %v958_v34  ;;  %v974_v36 = vsel %vm120_vm1, %v970_v32, -1e+30  ;;  %v984_v42 = vsel %vm153_vm0, %v976_v40, -inf }
 0x788   : > { %v978_v37 = vsel %vm153_vm0, %v974_v36, -inf  ;;  %v977_v43 = vsel %vm120_vm1, %v973_v38, -1e+30 }
 0x789   : > { %979 = vmax.xlane.f32.xlu0 %v978_v37  ;;  %v975_v39 = vsel %vm120_vm1, %v971_v35, -1e+30  ;;  %v987_v44 = vsel %vm153_vm0, %v977_v43, -inf }
 0x78a   : > { %v981_v41 = vsel %vm153_vm0, %v975_v39, -inf }
 0x78b   : > { %982 = vmax.xlane.f32.xlu1 %v981_v41 }
 0x78d   : > { %985 = vmax.xlane.f32.xlu0 %v984_v42 }
 0x791   : > { %988 = vmax.xlane.f32.xlu0 %v987_v44 }
 0x816   : > { %v980_v45 = vpop.xlane.xlu0 %979 }
 0x817   : > { %v990_v46 = vsub.f32 %v974_v36, %v980_v45 }
 0x818   : > { %v983_v47 = vpop.xlane.xlu1 %982 }
 0x819   : > { %v994_v50 = vmul.f32 1.442695, %v990_v46  ;;  %v991_v51 = vsub.f32 %v975_v39, %v983_v47 }
 0x81a   : > { %v986_v48 = vpop.xlane.xlu0 %985 }
 0x81b   : > { %v992_v49 = vsub.f32 %v976_v40, %v986_v48  ;;  %v996_v55 = vmul.f32 1.442695, %v991_v51 }
 0x81d   : > { %v998_v52 = vmul.f32 1.442695, %v992_v49 }
 0x81e   : > { %v989_v53 = vpop.xlane.xlu0 %988 }
 0x81f   : > { %1450 = vpow2.f32 %v998_v52  ;;  %v993_v54 = vsub.f32 %v977_v43, %v989_v53 }
 0x820   : > { %1452 = vpow2.f32 %v994_v50 }
 0x821   : > { %v1000_v56 = vmul.f32 1.442695, %v993_v54 }
 0x823   : > { %1454 = vpow2.f32 %v1000_v56 }
 0x824   : > { %1456 = vpow2.f32 %v996_v55 }
 0x829   : > { %v1658_v7 = vpop.eup %1450 }
 0x82a   : > { %v1008_v57 = vsel %vm153_vm0, %v1658_v7, 0.0  ;;  %v1453_v58 = vpop.eup %1452 }
 0x82b   : > { %1009 = vadd.xlane.f32.xlu0 %v1008_v57  ;;  %v1002_v60 = vsel %vm153_vm0, %v1453_v58, 0.0 }
 0x82d   : > { %v1455_v59 = vpop.eup %1454 }
 0x82e   : > { %v1011_v61 = vsel %vm153_vm0, %v1455_v59, 0.0  ;;  %v1457_v62 = vpop.eup %1456 }
 0x82f   : > { %1003 = vadd.xlane.f32.xlu0 %v1002_v60  ;;  %1012 = vadd.xlane.f32.xlu1 %v1011_v61  ;;  %v1005_v63 = vsel %vm153_vm0, %v1457_v62, 0.0 }
 0x833   : > { %1006 = vadd.xlane.f32.xlu1 %v1005_v63 }
 0x844   : > { %1036 = vrot.lane.b32.xlu1 %v1400_v0, %s1476_s18 }
 0x845   : > { %1034 = vrot.lane.b32.xlu0 %v1401_v1, %s1476_s18 }
 0x848   : > { %597 = vrot.lane.b32.xlu1 %v1250_v2, %s1476_s18 }
 0x849   : > { %601 = vrot.lane.b32.xlu0 %v1252_v3, %s1476_s18 }
 0x84c   : > { %599 = vrot.lane.b32.xlu1 %v1251_v4, %s1476_s18 }
 0x84d   : > { %852 = vrot.lane.b32.xlu0 %v1254_v5, %s1475_s17 }
 0x850   : > { %603 = vrot.lane.b32.xlu1 %v1253_v6, %s1476_s18 }
 0x851   : > { %856 = vrot.lane.b32.xlu0 %v1256_v17, %s1475_s17 }
 0x854   : > { %854 = vrot.lane.b32.xlu1 %v1255_v16, %s1475_s17 }
 0x858   : > { %858 = vrot.lane.b32.xlu1 %v1257_v19, %s1475_s17 }
 0x8b8   : > { %v1010_v8 = vpop.xlane.xlu0 %1009 }
 0x8bc   : > { %v1004_v18 = vpop.xlane.xlu0 %1003  ;;  %v1013_v9 = vpop.xlane.xlu1 %1012 }
 0x8bd   : > { %1458 = vrcp.f32 %v1013_v9 }
 0x8be   : > { %1460 = vrcp.f32 %v1004_v18 }
 0x8bf   : > { %1462 = vrcp.f32 %v1010_v8 }
 0x8c0   : > { %v1035_v10 = vpop.permute.xlu0 %1034  ;;  %v1007_v11 = vpop.xlane.xlu1 %1006 }
 0x8c1   : > { %1464 = vrcp.f32 %v1007_v11  ;;  %1350 = vmatprep.subr.bf16.mxu0 %v1035_v10 }
 0x8c2   : > { %1351 = vmatpush3.bf16.msra.mxu0 %v1035_v10 }
 0x8c4   : > { %v602_v12 = vpop.permute.xlu0 %601  ;;  %v1037_v13 = vpop.permute.xlu1 %1036 }
 0x8c5   : > { %612 = vst.msk [vmem:[%s1554_s16 + $0x8] sm:$0xf] %vm609_vm3, %v602_v12  ;;  %1352 = vmatprep.subr.bf16.mxu0 %v1037_v13 }
 0x8c6   : > { %1353 = vmatpush3.bf16.msra.mxu0 %v1037_v13 }
 0x8c7   : > { %v1459_v14 = vpop.eup %1458 }
 0x8c8   : > { %v853_v15 = vpop.permute.xlu0 %852  ;;  %v598_v20 = vpop.permute.xlu1 %597  ;;  %v1021_v24 = vmul.f32 %v1459_v14, %v1455_v59 }
 0x8c9   : > { %v1461_v21 = vpop.eup %1460  ;;  %610 = vst.msk [vmem:[%s1554_s16] sm:$0xf] %vm609_vm3, %v598_v20 }
 0x8ca   : > { %v1463_v22 = vpop.eup %1462  ;;  %865 = vst.msk [vmem:[%s1554_s16] sm:$0xf] %vm864_vm4, %v853_v15  ;;  %v1018_v27 = vmul.f32 %v1461_v21, %v1453_v58 }
 0x8cb   : > { %v1465_v23 = vpop.eup %1464  ;;  %v1020_v29 = vmul.f32 %v1463_v22, %v1658_v7 }
 0x8cc   : > { %v857_v25 = vpop.permute.xlu0 %856  ;;  %v600_v26 = vpop.permute.xlu1 %599  ;;  %v1019_v28 = vmul.f32 %v1465_v23, %v1457_v62 }
 0x8cd   : > { %867 = vst.msk [vmem:[%s1554_s16 + $0x8] sm:$0xf] %vm864_vm4, %v857_v25  ;;  %v1023_v31 = vpack.c.bf16 %v1021_v24, %v1020_v29 }
 0x8ce   : > { %611 = vst.msk [vmem:[%s1554_s16 + $0x4] sm:$0xf] %vm609_vm3, %v600_v26  ;;  %v1022_v30 = vpack.c.bf16 %v1019_v28, %v1018_v27 }
 0x8d0   : > { %1354 = vmatprep.mubr.msk.bf16.mxu0 %vm153_vm0, %v1022_v30  ;;  %v604_v32 = vpop.permute.xlu1 %603 }
 0x8d1   : > { %613 = vst.msk [vmem:[%s1554_s16 + $0xc] sm:$0xf] %vm609_vm3, %v604_v32  ;;  %1355 = vmatmul.mubr.msk.bf16.vlgmr.msra.gmra.mrb[12].mxu0 %vm153_vm0, %v1023_v31 }
 0x8d4   : > { %v855_v33 = vpop.permute.xlu1 %854 }
 0x8d5   : > { %866 = vst.msk [vmem:[%s1554_s16 + $0x4] sm:$0xf] %vm864_vm4, %v855_v33 }
 0x8d8   : > { %v859_v34 = vpop.permute.xlu1 %858 }
 0x8d9   : > { %868 = vst.msk [vmem:[%s1554_s16 + $0xc] sm:$0xf] %vm864_vm4, %v859_v34 }
 0x9a4   : > { %v1356_v35 = vpop.f32.mrb[12].mxu0 }
 0x9a5   : > { %v1080_v36 = vpop.f32.mrb[13].mxu0  ;;  %v1260_v41 = vpack.c.bf16 %v1356_v35, %v1356_v35 }
 0x9a6   : > { %v1258_v37 = vpack.c.bf16 %v1080_v36, %v1080_v36  ;;  %v1357_v38 = vpop.f32.mrb[14].mxu0 }
 0x9a7   : > { %v1083_v39 = vpop.f32.mrb[15].mxu0  ;;  %v1261_v42 = vpack.c.bf16 %v1357_v38, %v1357_v38 }
 0x9a8   : > { %v1259_v40 = vpack.c.bf16 %v1083_v39, %v1083_v39  ;;  %1107 = vrot.lane.b32.xlu0 %v1258_v37, %s1474_s12 }
 0x9aa   : > { %1109 = vrot.lane.b32.xlu1 %v1259_v40, %s1474_s12 }
 0x9ac   : > { %1111 = vrot.lane.b32.xlu0 %v1260_v41, %s1474_s12 }
 0x9ae   : > { %1113 = vrot.lane.b32.xlu1 %v1261_v42, %s1474_s12 }
 0xa1a   : > { %v1108_v43 = vpop.permute.xlu0 %1107 }
 0xa1b   : > { %1120 = vst.msk [vmem:[%s1554_s16] sm:$0xf] %vm1119_vm5, %v1108_v43 }
 0xa1c   : > { %v1110_v44 = vpop.permute.xlu1 %1109 }
 0xa1d   : > { %1121 = vst.msk [vmem:[%s1554_s16 + $0x4] sm:$0xf] %vm1119_vm5, %v1110_v44 }
 0xa1e   : > { %v1112_v45 = vpop.permute.xlu0 %1111 }
 0xa1f   : > { %1122 = vst.msk [vmem:[%s1554_s16 + $0x8] sm:$0xf] %vm1119_vm5, %v1112_v45 }
 0xa20   : > { %v1114_v46 = vpop.permute.xlu1 %1113 }
 0xa21   : > { %1123 = vst.msk [vmem:[%s1554_s16 + $0xc] sm:$0xf] %vm1119_vm5, %v1114_v46 }
 0xa22 PF: > { %s11_s6 = sadd.s32 1, %s1472_s6  }
 0xa23   : > { %p8_p4 = scmp.ge.s32.totalorder %s11_s6, 4  }
 0xa25   :  { %10 = sbr.rel (!%p8_p4) target bundleno = 1 (0x1), region = 54 }

// kernel: conch_vision_embedding_forward.14
= control target key start
LH: loop header
LB: loop body
LE: loop exit
PB: predicated region body
PF: predicated region fallthrough
CT: control target
= control target key end

     0   :  { %s1041_s24 = smov 0   ;;  %s1259_s0 = inlined_call_operand.vmem [shape: f32[64,128], index: 0, kind: input, shape index: {}]   ;;  %s1260_s1 = inlined_call_operand.vmem [shape: f32[1,128], index: 1, kind: input, shape index: {}]   ;;  %s1261_s2 = inlined_call_operand.vmem [shape: f32[1,128], index: 2, kind: input, shape index: {}]   ;;  %s1262_s3 = inlined_call_operand.vmem [shape: bf16[128,256], index: 3, kind: input, shape index: {}]   ;;  %s1263_s4 = inlined_call_operand.vmem [shape: f32[1,256], index: 4, kind: input, shape index: {}]   ;;  %s1264_s5 = inlined_call_operand.vmem [shape: bf16[256,128], index: 5, kind: input, shape index: {}]   ;;  %s1265_s6 = inlined_call_operand.vmem [shape: f32[1,128], index: 6, kind: input, shape index: {}]   ;;  %s1266_s7 = inlined_call_operand.vmem [shape: f32[64,128], index: 7, kind: output, shape index: {}]  }
   0x1 LB: > { %s845_s25 = sadd.s32 4294967295, %s998_s24   ;;  %p849_p0 = scmp.ge.s32.totalorder %s998_s24, 1  ;;  %s998_s24 = sphi %s1041_s24, %s17_s24  }
   0x2   : > { %p238_p1 = scmp.lt.s32.totalorder %s998_s24, 3 }
   0x4   : > { %p239_p2 = pnand %p849_p0, %p238_p1 }
   0x5   : > { %s850_s26 = sshll.u32 (!%p239_p2), %s845_s25, 2  ;;  %v928_v4 = vld [vmem:[%s1262_s3 + $0x4] ss:$8 sps:$4 sm:$0xff] (!%p239_p2)   ;;  %v930_v5 = vld [vmem:[%s1262_s3] ss:$8 sps:$4 sm:$0xff] (!%p239_p2)   ;;  %v1000_v33 = vmov (!%p239_p2), 0  }
   0x6   : > { %242 = sbr.rel (%p239_p2) target bundleno = 809 (0x329), region = 48  ;;  %p271_p3 = scmp.lt.s32.totalorder (!%p239_p2), %s850_s26, 7  ;;  %v931_v6 = vld [vmem:[%s1262_s3 + $0x14] ss:$8 sps:$4 sm:$0xff] (!%p239_p2)   ;;  %475 = vmatprep.subr.bf16.mxu0 (!%p239_p2), %v928_v4  ;;  %v933_v23 = vld [vmem:[%s1262_s3 + $0x10] ss:$8 sps:$4 sm:$0xff] (!%p239_p2)   ;;  %507 = vmatprep.mubr.bf16.mxu0 (!%p239_p2), %v1000_v33 }
   0x7   : > { %476 = vmatpush1.bf16.msra.mxu0 (!%p239_p2), %v930_v5  ;;  %v934_v24 = vld [vmem:[%s1262_s3 + $0x24] ss:$8 sps:$4 sm:$0xff] (!%p239_p2)   ;;  %v936_v25 = vld [vmem:[%s1262_s3 + $0x20] ss:$8 sps:$4 sm:$0xff] (!%p239_p2)   ;;  %v937_v26 = vld [vmem:[%s1262_s3 + $0x34] ss:$8 sps:$4 sm:$0xff] (!%p239_p2)  }
   0x8   : > { %477 = vmatprep.subr.bf16.mxu0 (!%p239_p2), %v931_v6  ;;  %v939_v27 = vld [vmem:[%s1262_s3 + $0x30] ss:$8 sps:$4 sm:$0xff] (!%p239_p2)   ;;  %v940_v28 = vld [vmem:[%s1262_s3 + $0x44] ss:$8 sps:$4 sm:$0xff] (!%p239_p2)   ;;  %v942_v29 = vld [vmem:[%s1262_s3 + $0x40] ss:$8 sps:$4 sm:$0xff] (!%p239_p2)  }
   0x9   : > { %v943_v30 = vld [vmem:[%s1262_s3 + $0x54] ss:$8 sps:$4 sm:$0xff] (!%p239_p2)   ;;  %v945_v31 = vld [vmem:[%s1262_s3 + $0x50] ss:$8 sps:$4 sm:$0xff] (!%p239_p2)   ;;  %v946_v32 = vld [vmem:[%s1262_s3 + $0x64] ss:$8 sps:$4 sm:$0xff] (!%p239_p2)  }
   0xa   : > { %v948_v34 = vld [vmem:[%s1262_s3 + $0x60] ss:$8 sps:$4 sm:$0xff] (!%p239_p2)   ;;  %v949_v35 = vld [vmem:[%s1262_s3 + $0x74] ss:$8 sps:$4 sm:$0xff] (!%p239_p2)   ;;  %v951_v36 = vld [vmem:[%s1262_s3 + $0x70] ss:$8 sps:$4 sm:$0xff] (!%p239_p2)  }
   0xb   : > { %478 = vmatpush1.bf16.msra.mxu0 (!%p239_p2), %v933_v23  ;;  %v854_v51 = vld [vmem:[%s1260_s1] ss:$0 sm:$0xff] (!%p239_p2)  ;;  %v966_v23 = vld [vmem:[%s1264_s5 + $0x78] sm:$0xff] (!%p239_p2)  }
   0xc   : > { %479 = vmatprep.subr.bf16.mxu0 (!%p239_p2), %v934_v24  ;;  %v855_v56 = vld [vmem:[%s1261_s2] ss:$0 sm:$0xff] (!%p239_p2)  ;;  %v967_v24 = vld [vmem:[%s1264_s5 + $0x38] sm:$0xff] (!%p239_p2)  }
   0xd   : > { %s1268_s26 = smov (!%p271_p3, %s850_s26), 7 }
   0xe   : > { %s851_s27 = sshll.u32 %s1268_s26, 3 }
   0xf   : > { %s274_s30 = scalar_lea.vmem %s1259_s0, %s851_s27  ;;  %480 = vmatpush1.bf16.msra.mxu0 %v936_v25  ;;  %v385_v25 = vlaneseq  ;;  %s280_s22 = scalar_lea.vmem %s1266_s7, %s851_s27 }
  0x10   : > { %v1057_v0 = vld [vmem:[%s274_s30] sm:$0xff]  ;;  %v1059_v1 = vld [vmem:[%s274_s30 + $0x10] sm:$0xff]  ;;  %v1061_v2 = vld [vmem:[%s274_s30 + $0x8] sm:$0xff]  ;;  %481 = vmatprep.subr.bf16.mxu0 %v937_v26 }
  0x11   : > { %287 = vadd.xlane.f32.xlu0 %v1057_v0  ;;  %291 = vadd.xlane.f32.xlu1 %v1059_v1  ;;  %v1065_v3 = vld [vmem:[%s274_s30 + $0x18] sm:$0xff]  ;;  %v386_v26 = vshrl.u32 %v385_v25, 7 }
  0x13   : > { %482 = vmatpush1.bf16.msra.mxu0 %v939_v27  ;;  %v387_v27 = vsub.s32 0, %v386_v26 }
  0x14   : > { %483 = vmatprep.subr.bf16.mxu0 %v940_v28  ;;  %v383_v28 = vld [vmem:[%s1263_s4] sm:$0x3] }
  0x15   : > { %289 = vadd.xlane.f32.xlu0 %v1061_v2  ;;  %293 = vadd.xlane.f32.xlu1 %v1065_v3 }
  0x17   : > { %484 = vmatpush1.bf16.msra.mxu0 %v942_v29  ;;  %v391_v29 = vsub.s32 1, %v386_v26 }
  0x18   : > { %485 = vmatprep.subr.bf16.mxu0 %v943_v30  ;;  %v388_v30 = vrot.slane %v383_v28, %v387_v27 }
  0x1b   : > { %486 = vmatpush1.bf16.msra.mxu0 %v945_v31  ;;  %v392_v31 = vrot.slane %v383_v28, %v391_v29 }
  0x1c   : > { %487 = vmatprep.subr.bf16.mxu0 %v946_v32 }
  0x1f   : > { %488 = vmatpush1.bf16.msra.mxu0 %v948_v34 }
  0x20   : > { %489 = vmatprep.subr.bf16.mxu0 %v949_v35 }
  0x23   : > { %490 = vmatpush1.bf16.msra.mxu0 %v951_v36 }
  0x9e   : > { %v288_v7 = vpop.xlane.xlu0 %287  ;;  %v292_v8 = vpop.xlane.xlu1 %291 }
  0x9f   : > { %v296_v9 = vmul.f32 0.0078125, %v288_v7  ;;  %v298_v10 = vmul.f32 0.0078125, %v292_v8 }
  0xa1   : > { %v300_v11 = vsub.f32 %v1057_v0, %v296_v9  ;;  %v1080_v12 = vsub.f32 %v1059_v1, %v298_v10  ;;  %v952_v9 = vld [vmem:[%s1264_s5 + $0x40] sm:$0xff]  }
  0xa2   : > { %v290_v13 = vpop.xlane.xlu0 %289  ;;  %v294_v14 = vpop.xlane.xlu1 %293  ;;  %v953_v10 = vld [vmem:[%s1264_s5] sm:$0xff]   ;;  %891 = vmatprep.subr.bf16.mxu1 %v952_v9 }
  0xa3   : > { %v297_v15 = vmul.f32 0.0078125, %v290_v13  ;;  %v304_v16 = vmul.f32 %v300_v11, %v300_v11  ;;  %v299_v17 = vmul.f32 0.0078125, %v294_v14  ;;  %v306_v20 = vmul.f32 %v1080_v12, %v1080_v12  ;;  %892 = vmatpush3.bf16.msra.mxu1 %v953_v10  ;;  %v956_v13 = vld [vmem:[%s1264_s5 + $0x50] sm:$0xff]  }
  0xa4   : > { %v957_v14 = vld [vmem:[%s1264_s5 + $0x10] sm:$0xff]  }
  0xa5   : > { %v301_v18 = vsub.f32 %v1061_v2, %v297_v15  ;;  %308 = vadd.xlane.f32.xlu0 %v304_v16  ;;  %v1084_v19 = vsub.f32 %v1065_v3, %v299_v17  ;;  %v958_v15 = vld [vmem:[%s1264_s5 + $0x58] sm:$0xff]   ;;  %v960_v17 = vld [vmem:[%s1264_s5 + $0x60] sm:$0xff]  }
  0xa6   : > { %v959_v16 = vld [vmem:[%s1264_s5 + $0x18] sm:$0xff]  }
  0xa7   : > { %v305_v21 = vmul.f32 %v301_v18, %v301_v18  ;;  %v307_v22 = vmul.f32 %v1084_v19, %v1084_v19 }
  0xa9   : > { %312 = vadd.xlane.f32.xlu0 %v306_v20  ;;  %310 = vadd.xlane.f32.xlu1 %v305_v21  ;;  %v963_v20 = vld [vmem:[%s1264_s5 + $0x28] sm:$0xff]   ;;  %v964_v21 = vld [vmem:[%s1264_s5 + $0x70] sm:$0xff]  }
  0xad   : > { %314 = vadd.xlane.f32.xlu1 %v307_v22  ;;  %v965_v22 = vld [vmem:[%s1264_s5 + $0x30] sm:$0xff]  }
 0x132   : > { %v309_v37 = vpop.xlane.xlu0 %308 }
 0x133   : > { %v316_v38 = vmul.f32 0.0078125, %v309_v37 }
 0x135   : > { %v320_v39 = vadd.f32 1e-05, %v316_v38 }
 0x136   : > { %v311_v40 = vpop.xlane.xlu1 %310  ;;  %v313_v41 = vpop.xlane.xlu0 %312 }
 0x137   : > { %968 = vrsqrt.f32 %v320_v39  ;;  %v317_v42 = vmul.f32 0.0078125, %v311_v40  ;;  %v318_v43 = vmul.f32 0.0078125, %v313_v41 }
 0x139   : > { %v321_v44 = vadd.f32 1e-05, %v317_v42  ;;  %v322_v45 = vadd.f32 1e-05, %v318_v43 }
 0x13a   : > { %v315_v46 = vpop.xlane.xlu1 %314 }
 0x13b   : > { %970 = vrsqrt.f32 %v321_v44  ;;  %v319_v47 = vmul.f32 0.0078125, %v315_v46 }
 0x13c   : > { %972 = vrsqrt.f32 %v322_v45 }
 0x13d   : > { %v323_v48 = vadd.f32 1e-05, %v319_v47 }
 0x13f   : > { %974 = vrsqrt.f32 %v323_v48 }
 0x141   : > { %v969_v49 = vpop.eup %968 }
 0x142   : > { %v328_v50 = vmul.f32 %v969_v49, %v300_v11  ;;  %v954_v11 = vld [vmem:[%s1264_s5 + $0x48] sm:$0xff]  }
 0x143   : > { %893 = vmatprep.subr.bf16.mxu1 %v954_v11 }
 0x144   : > { %v339_v54 = vmul.f32 %v854_v51, %v328_v50 }
 0x145   : > { %v971_v52 = vpop.eup %970 }
 0x146   : > { %v329_v53 = vmul.f32 %v971_v52, %v301_v18  ;;  %v973_v55 = vpop.eup %972  ;;  %v350_v59 = vadd.f32 %v855_v56, %v339_v54  ;;  %v961_v18 = vld [vmem:[%s1264_s5 + $0x20] sm:$0xff]  }
 0x147   : > { %v330_v61 = vmul.f32 %v973_v55, %v1080_v12  ;;  %v955_v12 = vld [vmem:[%s1264_s5 + $0x8] sm:$0xff]  }
 0x148   : > { %v340_v57 = vmul.f32 %v854_v51, %v329_v53  ;;  %894 = vmatpush3.bf16.msra.mxu1 %v955_v12 }
 0x149   : > { %v975_v58 = vpop.eup %974  ;;  %v341_v5 = vmul.f32 %v854_v51, %v330_v61  ;;  %895 = vmatprep.subr.bf16.mxu1 %v956_v13 }
 0x14a   : > { %v351_v60 = vadd.f32 %v855_v56, %v340_v57  ;;  %v331_v62 = vmul.f32 %v975_v58, %v1084_v19  ;;  %v962_v19 = vld [vmem:[%s1264_s5 + $0x68] sm:$0xff]  }
 0x14b   : > { %v352_v7 = vadd.f32 %v855_v56, %v341_v5 }
 0x14c   : > { %v354_v63 = vpack.c.bf16 %v351_v60, %v350_v59  ;;  %v342_v4 = vmul.f32 %v854_v51, %v331_v62  ;;  %896 = vmatpush3.bf16.msra.mxu1 %v957_v14 }
 0x14d   : > { %897 = vmatprep.subr.bf16.mxu1 %v958_v15 }
 0x14e   : > { %508 = vmatmul.mubr.bf16.vlgmr.msra.gmra.mrb[0].mxu0 %v354_v63  ;;  %v353_v6 = vadd.f32 %v855_v56, %v342_v4 }
 0x14f   : > { %517 = vmatprep.mubr.bf16.mxu0 %v1000_v33 }
 0x150   : > { %v355_v8 = vpack.c.bf16 %v353_v6, %v352_v7  ;;  %898 = vmatpush3.bf16.msra.mxu1 %v959_v16 }
 0x151   : > { %899 = vmatprep.subr.bf16.mxu1 %v960_v17 }
 0x154   : > { %900 = vmatpush3.bf16.msra.mxu1 %v961_v18 }
 0x155   : > { %901 = vmatprep.subr.bf16.mxu1 %v962_v19 }
 0x156   : > { %518 = vmatmul.mubr.bf16.gmra.mrb[4].mxu0 %v355_v8 }
 0x158   : > { %902 = vmatpush3.bf16.msra.mxu1 %v963_v20 }
 0x159   : > { %903 = vmatprep.subr.bf16.mxu1 %v964_v21 }
 0x15c   : > { %904 = vmatpush3.bf16.msra.mxu1 %v965_v22 }
 0x15d   : > { %905 = vmatprep.subr.bf16.mxu1 %v966_v23 }
 0x160   : > { %906 = vmatpush3.bf16.msra.mxu1 %v967_v24 }
 0x221   : > { %v509_v32 = vpop.f32.mrb[0].mxu0 }
 0x222   : > { %v1188_v33 = vadd.f32 %v509_v32, %v388_v30  ;;  %v511_v34 = vpop.f32.mrb[1].mxu0 }
 0x223   : > { %v1190_v35 = vadd.f32 %v511_v34, %v392_v31  ;;  %v513_v36 = vpop.f32.mrb[2].mxu0 }
 0x224   : > { %v528_v37 = vmul.f32 %v1188_v33, %v1188_v33  ;;  %v1194_v38 = vadd.f32 %v513_v36, %v388_v30  ;;  %v515_v39 = vpop.f32.mrb[3].mxu0 }
 0x225   : > { %v529_v40 = vmul.f32 %v1190_v35, %v1190_v35  ;;  %v1198_v41 = vadd.f32 %v515_v39, %v392_v31 }
 0x226   : > { %v536_v42 = vmul.f32 %v528_v37, %v1188_v33  ;;  %v530_v43 = vmul.f32 %v1194_v38, %v1194_v38 }
 0x227   : > { %v537_v44 = vmul.f32 %v529_v40, %v1190_v35  ;;  %v531_v45 = vmul.f32 %v1198_v41, %v1198_v41 }
 0x228   : > { %v544_v46 = vmul.f32 0.044715, %v536_v42  ;;  %v538_v47 = vmul.f32 %v530_v43, %v1194_v38 }
 0x229   : > { %v545_v48 = vmul.f32 0.044715, %v537_v44  ;;  %v539_v49 = vmul.f32 %v531_v45, %v1198_v41  ;;  %v519_v50 = vpop.f32.mrb[4].mxu0 }
 0x22a   : > { %v552_v51 = vadd.f32 %v544_v46, %v1188_v33  ;;  %v546_v52 = vmul.f32 0.044715, %v538_v47  ;;  %v1209_v53 = vadd.f32 %v519_v50, %v388_v30  ;;  %v521_v54 = vpop.f32.mrb[5].mxu0 }
 0x22b   : > { %v547_v55 = vmul.f32 0.044715, %v539_v49  ;;  %v1211_v56 = vadd.f32 %v521_v54, %v392_v31  ;;  %v523_v57 = vpop.f32.mrb[6].mxu0  ;;  %v553_v58 = vadd.f32 %v545_v48, %v1190_v35 }
 0x22c   : > { %v560_v59 = vmul.f32 0.7978846, %v552_v51  ;;  %v554_v60 = vadd.f32 %v546_v52, %v1194_v38  ;;  %v532_v61 = vmul.f32 %v1209_v53, %v1209_v53  ;;  %v1217_v62 = vadd.f32 %v523_v57, %v388_v30  ;;  %v525_v63 = vpop.f32.mrb[7].mxu0 }
 0x22d   : > { %v533_v4 = vmul.f32 %v1211_v56, %v1211_v56  ;;  %v1221_v5 = vadd.f32 %v525_v63, %v392_v31  ;;  %v555_v6 = vadd.f32 %v547_v55, %v1198_v41  ;;  %v561_v7 = vmul.f32 0.7978846, %v553_v58 }
 0x22e   : > { %976 = vtanh.f32 %v560_v59  ;;  %v562_v8 = vmul.f32 0.7978846, %v554_v60  ;;  %v540_v9 = vmul.f32 %v532_v61, %v1209_v53  ;;  %v534_v10 = vmul.f32 %v1217_v62, %v1217_v62 }
 0x22f   : > { %v541_v11 = vmul.f32 %v533_v4, %v1211_v56  ;;  %v535_v12 = vmul.f32 %v1221_v5, %v1221_v5  ;;  %v563_v13 = vmul.f32 0.7978846, %v555_v6  ;;  %978 = vtanh.f32 %v561_v7 }
 0x230   : > { %980 = vtanh.f32 %v562_v8  ;;  %v548_v14 = vmul.f32 0.044715, %v540_v9  ;;  %v542_v15 = vmul.f32 %v534_v10, %v1217_v62  ;;  %v856_v8 = vld [vmem:[%s1265_s6] ss:$0 sm:$0xff] }
 0x231   : > { %v549_v16 = vmul.f32 0.044715, %v541_v11  ;;  %v543_v17 = vmul.f32 %v535_v12, %v1221_v5  ;;  %982 = vtanh.f32 %v563_v13  ;;  %v363_v9 = vadd.f32 %v856_v8, %v1057_v0 }
 0x232   : > { %v556_v18 = vadd.f32 %v548_v14, %v1209_v53  ;;  %v550_v19 = vmul.f32 0.044715, %v542_v15  ;;  %v365_v15 = vadd.f32 %v856_v8, %v1059_v1 }
 0x233   : > { %v557_v20 = vadd.f32 %v549_v16, %v1211_v56  ;;  %v551_v21 = vmul.f32 0.044715, %v543_v17  ;;  %v366_v17 = vadd.f32 %v856_v8, %v1065_v3 }
 0x234   : > { %v564_v22 = vmul.f32 0.7978846, %v556_v18  ;;  %v558_v23 = vadd.f32 %v550_v19, %v1217_v62 }
 0x235   : > { %v565_v24 = vmul.f32 0.7978846, %v557_v20  ;;  %v559_v25 = vadd.f32 %v551_v21, %v1221_v5 }
 0x236   : > { %984 = vtanh.f32 %v564_v22  ;;  %v566_v26 = vmul.f32 0.7978846, %v558_v23 }
 0x237   : > { %986 = vtanh.f32 %v565_v24  ;;  %v567_v27 = vmul.f32 0.7978846, %v559_v25 }
 0x238   : > { %v977_v28 = vpop.eup %976  ;;  %988 = vtanh.f32 %v566_v26 }
 0x239   : > { %v979_v29 = vpop.eup %978  ;;  %990 = vtanh.f32 %v567_v27  ;;  %v576_v30 = vadd.f32 1.0, %v977_v28 }
 0x23a   : > { %v981_v31 = vpop.eup %980  ;;  %v577_v32 = vadd.f32 1.0, %v979_v29 }
 0x23b   : > { %v983_v34 = vpop.eup %982  ;;  %v578_v36 = vadd.f32 1.0, %v981_v31  ;;  %v584_v37 = vmul.f32 0.5, %v576_v30 }
 0x23c   : > { %v579_v39 = vadd.f32 1.0, %v983_v34  ;;  %v585_v40 = vmul.f32 0.5, %v577_v32 }
 0x23d   : > { %v586_v42 = vmul.f32 0.5, %v578_v36  ;;  %v592_v44 = vmul.f32 %v584_v37, %v1188_v33 }
 0x23e   : > { %v587_v43 = vmul.f32 0.5, %v579_v39  ;;  %v593_v47 = vmul.f32 %v585_v40, %v1190_v35 }
 0x23f   : > { %v594_v45 = vmul.f32 %v586_v42, %v1194_v38 }
 0x240   : > { %v985_v46 = vpop.eup %984  ;;  %v595_v48 = vmul.f32 %v587_v43, %v1198_v41 }
 0x241   : > { %v987_v49 = vpop.eup %986  ;;  %v600_v50 = vpack.c.bf16 %v594_v45, %v592_v44  ;;  %v580_v51 = vadd.f32 1.0, %v985_v46 }
 0x242   : > { %v989_v52 = vpop.eup %988  ;;  %v601_v54 = vpack.c.bf16 %v595_v48, %v593_v47  ;;  %v581_v55 = vadd.f32 1.0, %v987_v49 }
 0x243   : > { %v991_v57 = vpop.eup %990  ;;  %v582_v58 = vadd.f32 1.0, %v989_v52  ;;  %v588_v59 = vmul.f32 0.5, %v580_v51 }
 0x244   : > { %764 = vmatprep.mubr.bf16.mxu1 %v601_v54  ;;  %v583_v60 = vadd.f32 1.0, %v991_v57  ;;  %v589_v61 = vmul.f32 0.5, %v581_v55 }
 0x245   : > { %765 = vmatmul.mubr.bf16.vlgmr.msra.gmra.mrb[0].mxu1 %v600_v50  ;;  %v590_v33 = vmul.f32 0.5, %v582_v58  ;;  %v596_v35 = vmul.f32 %v588_v59, %v1209_v53  ;;  %v364_v53 = vadd.f32 %v856_v8, %v1061_v2 }
 0x246   : > { %v591_v38 = vmul.f32 0.5, %v583_v60  ;;  %v597_v63 = vmul.f32 %v589_v61, %v1211_v56 }
 0x247   : > { %v598_v41 = vmul.f32 %v590_v33, %v1217_v62 }
 0x248   : > { %v599_v4 = vmul.f32 %v591_v38, %v1221_v5 }
 0x249   : > { %v602_v6 = vpack.c.bf16 %v598_v41, %v596_v35 }
 0x24a   : > { %v603_v7 = vpack.c.bf16 %v599_v4, %v597_v63 }
 0x24c   : > { %772 = vmatprep.mubr.bf16.mxu1 %v603_v7 }
 0x24d   : > { %773 = vmatmul.mubr.bf16.gmra.mrb[4].mxu1 %v602_v6 }
 0x318   : > { %v907_v10 = vpop.f32.mrb[0].mxu1 }
 0x319   : > { %v908_v11 = vpop.f32.mrb[1].mxu1 }
 0x31a   : > { %v909_v12 = vadd.f32 %v908_v11, %v907_v10  ;;  %v910_v62 = vpop.f32.mrb[2].mxu1 }
 0x31b   : > { %v911_v56 = vpop.f32.mrb[3].mxu1 }
 0x31c   : > { %v781_v5 = vadd.f32 %v909_v12, %v363_v9  ;;  %v912_v13 = vadd.f32 %v911_v56, %v910_v62 }
 0x31e   : > { %785 = vst [vmem:[%s280_s22] sm:$0xff] %v781_v5  ;;  %v782_v14 = vadd.f32 %v912_v13, %v364_v53 }
 0x320   : > { %786 = vst [vmem:[%s280_s22 + $0x8] sm:$0xff] %v782_v14  ;;  %v913_v0 = vpop.f32.mrb[4].mxu1 }
 0x321   : > { %v914_v16 = vpop.f32.mrb[5].mxu1 }
 0x322   : > { %v915_v2 = vadd.f32 %v914_v16, %v913_v0  ;;  %v916_v18 = vpop.f32.mrb[6].mxu1 }
 0x323   : > { %v917_v19 = vpop.f32.mrb[7].mxu1 }
 0x324   : > { %v783_v20 = vadd.f32 %v915_v2, %v365_v15  ;;  %v918_v21 = vadd.f32 %v917_v19, %v916_v18 }
 0x326   : > { %787 = vst [vmem:[%s280_s22 + $0x10] sm:$0xff] %v783_v20  ;;  %v784_v22 = vadd.f32 %v918_v21, %v366_v17 }
 0x328   : > { %788 = vst [vmem:[%s280_s22 + $0x18] sm:$0xff] %v784_v22 }
 0x329 PF: > { %s17_s24 = sadd.s32 1, %s998_s24  }
 0x32a   : > { %p14_p4 = scmp.ge.s32.totalorder %s17_s24, 4  }
 0x32c   :  { %16 = sbr.rel (!%p14_p4) target bundleno = 1 (0x1), region = 78 }

</bundles_post_ra>
